<compile_context>
chip_gen: v7x
topology: tpu7x:2x2x1
jax: 0.10.0
libtpu: 0.0.40
codegen_flags: <defaults>
</compile_context>

<pallas_src>
import functools

import jax
import jax.numpy as jnp
from jax import lax
from jax.experimental import pallas as pl
from jax.experimental.pallas import tpu as pltpu

EPS = 1e-5  # PyTorch BatchNorm default eps


# --------------------------------------------------------------------------
# Fused Pallas kernel (one grid step = one chunk of Bc batch elements)
# --------------------------------------------------------------------------

def _cnn_fused_kernel(x_ref, w0_ref, s0_ref, t0_ref, w1_ref, s1_ref, t1_ref,
                      lin_ref, ibs_ref, osc_ref, o_ref,
                      st0_ref, st1_ref, head_ref,
                      *, K0, K1, W, HW, Bc):
    """Full forward for one batch chunk, entirely in VMEM.

    Layouts (batch folded on the lane axis, per-element lane stride HW):
      x_ref    : (Cin, Bc*HW)      wide row-major spatial layout (row stride W)
      w0_ref   : (C0, K0*K0*Cin)   tap-stacked conv0 weight
      s0/t0    : (C0, Lt0)         folded BN0+bias scale/shift, tiled per element
      w1_ref   : (C1, K1*K1*C0)
      s1/t1    : (C1, Lt1)
      lin_ref  : (N, C1*HW)        lane-dense linear weight (* input_scale)
      ibs/osc  : (1, N)            input_bias*input_scale, output_scale
      o_ref    : (1, Bc, N)
      st0/st1  : VMEM scratch, sublane-stacked shifted views
      head_ref : VMEM scratch, (Bc, C1*HW) per-element flattened activations
    Garbage wide columns are neutralized by zero scale/shift/lin weights.
    """
    f32 = jnp.float32
    Cin = x_ref.shape[0]
    C0, Lt0 = s0_ref.shape
    C1, Lt1 = s1_ref.shape

    x = x_ref[...]                                            # (Cin, Bc*HW)

    # ---- conv0: stack the K0*K0 shifted views on sublanes -> ONE matmul ----
    for t in range(K0 * K0):
        dy, dx = divmod(t, K0)
        off = dy * W + dx
        st0_ref[t * Cin:(t + 1) * Cin, :] = x[:, off:off + Lt0]
    acc0 = jnp.dot(w0_ref[...], st0_ref[...], preferred_element_type=f32)
    a0 = jnp.maximum(acc0 * s0_ref[...] + t0_ref[...], 0.0)   # (C0, Lt0)

    # ---- conv1: same tap-stacking -> ONE matmul ----
    for t in range(K1 * K1):
        dy, dx = divmod(t, K1)
        off = dy * W + dx
        st1_ref[t * C0:(t + 1) * C0, :] = a0[:, off:off + Lt1]
    acc1 = jnp.dot(w1_ref[...], st1_ref[...], preferred_element_type=f32)
    a1 = jnp.maximum(acc1 * s1_ref[...] + t1_ref[...], 0.0)   # (C1, Lt1)

    # ---- head: (C1, Bc*HW) -> (Bc, C1*HW), then ONE matmul ----
    # Zero first so unwritten (garbage) columns are finite; their lin weights
    # are zero, so they contribute nothing.
    head_ref[...] = jnp.zeros(head_ref.shape, f32)
    for b in range(Bc):
        wv = min(HW, Lt1 - b * HW)          # last element's strip is truncated
        for c in range(C1):
            head_ref[b:b + 1, c * HW:c * HW + wv] = \
                a1[c:c + 1, b * HW:b * HW + wv]
    out = lax.dot_general(head_ref[...], lin_ref[...],
                          dimension_numbers=(((1,), (1,)), ((), ())),
                          preferred_element_type=f32)          # (Bc, N)

    y = out + ibs_ref[...]
    # numerically-stable softplus: max(y,0) + log1p(exp(-|y|))
    y = jnp.maximum(y, 0.0) + jnp.log1p(jnp.exp(-jnp.abs(y)))
    o_ref[0] = (y * osc_ref[...]).astype(o_ref.dtype)


# --------------------------------------------------------------------------
# One-time parameter preprocessing (hoisted out of the per-call forward)
# --------------------------------------------------------------------------

def fold_params(params, H, W, Bc):
    f32 = jnp.float32
    HW = H * W
    C0, Cin, K0, _ = params["w0"].shape
    C1, _, K1, _ = params["w1"].shape
    Ho0, Wo0 = H - K0 + 1, W - K0 + 1
    Ho1, Wo1 = Ho0 - K1 + 1, Wo0 - K1 + 1
    L0 = (Ho0 - 1) * W + Wo0            # per-element wide length (row stride W)
    L1 = (Ho1 - 1) * W + Wo1
    Lt0 = (Bc - 1) * HW + L0            # chunk-wide lengths
    Lt1 = (Bc - 1) * HW + L1
    N = params["lin_w"].shape[0]

    def widen_tile(v, C, Ho, Wo, Lt):
        # (C, Ho, Wo) -> per-element wide (C, HW) with row stride W, zeros on
        # garbage columns -> tile Bc times along lanes -> truncate to Lt.
        buf = jnp.zeros((C, Ho, W), f32).at[:, :, :Wo].set(v)
        wide = jnp.zeros((C, HW), f32).at[:, :Ho * W].set(buf.reshape(C, Ho * W))
        return jnp.tile(wide, (1, Bc))[:, :Lt]

    def bn_fold(gamma, beta, mean, var, conv_bias, C, Ho, Wo, Lt):
        sc = (gamma / jnp.sqrt(var + EPS)).reshape(C, Ho, Wo)
        sh = (beta - mean * gamma / jnp.sqrt(var + EPS)).reshape(C, Ho, Wo)
        sh = sh + conv_bias[:, None, None] * sc
        return widen_tile(sc, C, Ho, Wo, Lt), widen_tile(sh, C, Ho, Wo, Lt)

    s0, t0 = bn_fold(params["bn0_gamma"], params["bn0_beta"], params["bn0_mean"],
                     params["bn0_var"], params["b0"], C0, Ho0, Wo0, Lt0)
    s1, t1 = bn_fold(params["bn1_gamma"], params["bn1_beta"], params["bn1_mean"],
                     params["bn1_var"], params["b1"], C1, Ho1, Wo1, Lt1)

    # tap-stacked conv weights: (Cout, K*K*Cin), row index = (dy*K+dx)*Cin + ci
    w0s = params["w0"].transpose(0, 2, 3, 1).reshape(C0, K0 * K0 * Cin).astype(f32)
    w1s = params["w1"].transpose(0, 2, 3, 1).reshape(C1, K1 * K1 * C0).astype(f32)

    # linear weight, lane-dense (N, C1*HW): column = c*HW + oy*W + ox, zero on
    # garbage wide columns; input_scale folded in per cell.
    lw = params["lin_w"].reshape(N, C1, Ho1, Wo1)
    lbuf = jnp.zeros((N, C1, Ho1, W), f32).at[:, :, :, :Wo1].set(lw)
    lin = jnp.zeros((N, C1, HW), f32).at[:, :, :Ho1 * W].set(
        lbuf.reshape(N, C1, Ho1 * W))
    lin = lin.reshape(N, C1 * HW) * params["input_scale"][:, None]

    return {
        "w0s": w0s, "s0": s0, "t0": t0,
        "w1s": w1s, "s1": s1, "t1": t1,
        "lin": lin,
        "ibs": (params["input_bias"] * params["input_scale"])[None, :],
        "osc": params["output_scale"][None, :],
    }


def _pick_batch_chunk(B):
    for bc in (8, 4, 2, 1):
        if bc <= B and B % bc == 0:
            return bc
    return 1


# --------------------------------------------------------------------------
# Forward pass: single fused pallas_call
# --------------------------------------------------------------------------

@jax.jit
def pallas_forward(x, fp):
    B, Cin, H, W = x.shape
    HW = H * W
    C0 = fp["w0s"].shape[0]
    K0 = int(round((fp["w0s"].shape[1] // Cin) ** 0.5))
    C1 = fp["w1s"].shape[0]
    K1 = int(round((fp["w1s"].shape[1] // C0) ** 0.5))
    Lt0 = fp["s0"].shape[1]
    Lt1 = fp["s1"].shape[1]
    N = fp["lin"].shape[0]
    L0 = HW - (K0 - 1) * (W + 1)
    Bc = (Lt0 - L0) // HW + 1           # batch-chunk size baked into fp
    assert B % Bc == 0, (B, Bc)
    G = B // Bc
    WB = Bc * HW

    # batch folded onto lanes: column b*HW + p  <->  x[b, :, p]
    x_wide = x.reshape(B, Cin, HW).transpose(1, 0, 2).reshape(Cin, B * HW)

    kernel = functools.partial(_cnn_fused_kernel, K0=K0, K1=K1, W=W, HW=HW, Bc=Bc)

    out = pl.pallas_call(
        kernel,
        out_shape=jax.ShapeDtypeStruct((G, Bc, N), jnp.float32),
        grid=(G,),
        in_specs=[
            pl.BlockSpec((Cin, WB), lambda g: (0, g)),
            pl.BlockSpec((C0, K0 * K0 * Cin), lambda g: (0, 0)),
            pl.BlockSpec((C0, Lt0), lambda g: (0, 0)),
            pl.BlockSpec((C0, Lt0), lambda g: (0, 0)),
            pl.BlockSpec((C1, K1 * K1 * C0), lambda g: (0, 0)),
            pl.BlockSpec((C1, Lt1), lambda g: (0, 0)),
            pl.BlockSpec((C1, Lt1), lambda g: (0, 0)),
            pl.BlockSpec((N, C1 * HW), lambda g: (0, 0)),
            pl.BlockSpec((1, N), lambda g: (0, 0)),
            pl.BlockSpec((1, N), lambda g: (0, 0)),
        ],
        out_specs=pl.BlockSpec((1, Bc, N), lambda g: (g, 0, 0)),
        scratch_shapes=[
            pltpu.VMEM((K0 * K0 * Cin, Lt0), jnp.float32),
            pltpu.VMEM((K1 * K1 * C0, Lt1), jnp.float32),
            pltpu.VMEM((Bc, C1 * HW), jnp.float32),
        ],
        compiler_params=pltpu.CompilerParams(
            dimension_semantics=("parallel",)),   # batch chunks -> 2 TCs on v7x
    )(x_wide, fp["w0s"], fp["s0"], fp["t0"], fp["w1s"], fp["s1"], fp["t1"],
      fp["lin"], fp["ibs"], fp["osc"])
    return out.reshape(B, N)


# --------------------------------------------------------------------------
# Pure-JAX reference (mirrors the PyTorch eval forward, NCHW)
# --------------------------------------------------------------------------

def reference_forward(x, params):
    B = x.shape[0]

    def bn_eval(yf, g, b, m, v):
        return (yf - m) / jnp.sqrt(v + EPS) * g + b

    y = jax.lax.conv_general_dilated(
        x, params["w0"], (1, 1), "VALID",
        dimension_numbers=("NCHW", "OIHW", "NCHW")) + params["b0"][None, :, None, None]
    shp = y.shape
    y = bn_eval(y.reshape(B, -1), params["bn0_gamma"], params["bn0_beta"],
                params["bn0_mean"], params["bn0_var"])
    y = jnp.maximum(y, 0.0).reshape(shp)

    y = jax.lax.conv_general_dilated(
        y, params["w1"], (1, 1), "VALID",
        dimension_numbers=("NCHW", "OIHW", "NCHW")) + params["b1"][None, :, None, None]
    y = bn_eval(y.reshape(B, -1), params["bn1_gamma"], params["bn1_beta"],
                params["bn1_mean"], params["bn1_var"])
    y = jnp.maximum(y, 0.0)

    z = y @ params["lin_w"].T
    z = (z + params["input_bias"]) * params["input_scale"]
    z = jax.nn.softplus(z)
    return z * params["output_scale"]


# --------------------------------------------------------------------------
# main
# --------------------------------------------------------------------------

if __name__ == "__main__":
    B = 2
    HISTORY_FRAMES = 4          # conv0 in-channels
    H = W = 16                  # stimulus_dim
    C0, K0 = 8, 3               # layer_0 channels / kernel_size
    C1, K1 = 8, 3               # layer_1 channels / kernel_size
    N_CELLS = 16

    Ho0, Wo0 = H - K0 + 1, W - K0 + 1
    Ho1, Wo1 = Ho0 - K1 + 1, Wo0 - K1 + 1
    F0 = C0 * Ho0 * Wo0
    F1 = C1 * Ho1 * Wo1

    key = jax.random.PRNGKey(0)
    ks = jax.random.split(key, 17)

    params = {
        "w0": 0.1 * jax.random.normal(ks[0], (C0, HISTORY_FRAMES, K0, K0), jnp.float32),
        "b0": 0.1 * jax.random.normal(ks[1], (C0,), jnp.float32),
        "w1": 0.1 * jax.random.normal(ks[2], (C1, C0, K1, K1), jnp.float32),
        "b1": 0.1 * jax.random.normal(ks[3], (C1,), jnp.float32),
        "bn0_gamma": 1.0 + 0.1 * jax.random.normal(ks[4], (F0,), jnp.float32),
        "bn0_beta": 0.1 * jax.random.normal(ks[5], (F0,), jnp.float32),
        "bn0_mean": 0.1 * jax.random.normal(ks[6], (F0,), jnp.float32),
        "bn0_var": jax.random.uniform(ks[7], (F0,), jnp.float32, 0.5, 1.5),
        "bn1_gamma": 1.0 + 0.1 * jax.random.normal(ks[8], (F1,), jnp.float32),
        "bn1_beta": 0.1 * jax.random.normal(ks[9], (F1,), jnp.float32),
        "bn1_mean": 0.1 * jax.random.normal(ks[10], (F1,), jnp.float32),
        "bn1_var": jax.random.uniform(ks[11], (F1,), jnp.float32, 0.5, 1.5),
        "lin_w": 0.05 * jax.random.normal(ks[12], (N_CELLS, F1), jnp.float32),
        "input_scale": 1.0 + 0.1 * jax.random.normal(ks[13], (N_CELLS,), jnp.float32),
        "input_bias": 0.1 * jax.random.normal(ks[14], (N_CELLS,), jnp.float32),
        "output_scale": 1.0 + 0.1 * jax.random.normal(ks[15], (N_CELLS,), jnp.float32),
    }

    x = jax.random.normal(ks[16], (B, HISTORY_FRAMES, H, W), jnp.float32)

    # parameter-only preprocessing: computed ONCE, outside the per-call forward
    Bc = _pick_batch_chunk(B)
    folded = fold_params(params, H, W, Bc)

    out = jax.block_until_ready(pallas_forward(x, folded))
    ref = jax.block_until_ready(reference_forward(x, params))

    assert out.shape == (B, N_CELLS), out.shape
    assert jnp.allclose(out, ref, rtol=1e-4, atol=1e-4), float(jnp.max(jnp.abs(out - ref)))

    print("KERNEL_OK")
</pallas_src>

<mosaic_0001>
module attributes {stable_mosaic.version = 11 : i64} {
  func.func @_cnn_fused_kernel(%arg0: i32, %arg1: memref<4x512xf32, #tpu.memory_space<vmem>>, %arg2: memref<8x36xf32, #tpu.memory_space<vmem>>, %arg3: memref<8x478xf32, #tpu.memory_space<vmem>>, %arg4: memref<8x478xf32, #tpu.memory_space<vmem>>, %arg5: memref<8x72xf32, #tpu.memory_space<vmem>>, %arg6: memref<8x444xf32, #tpu.memory_space<vmem>>, %arg7: memref<8x444xf32, #tpu.memory_space<vmem>>, %arg8: memref<16x2048xf32, #tpu.memory_space<vmem>>, %arg9: memref<1x16xf32, #tpu.memory_space<vmem>>, %arg10: memref<1x16xf32, #tpu.memory_space<vmem>>, %arg11: memref<1x2x16xf32, #tpu.memory_space<vmem>>, %arg12: memref<36x478xf32, #tpu.memory_space<vmem>>, %arg13: memref<72x444xf32, #tpu.memory_space<vmem>>, %arg14: memref<2x2048xf32, #tpu.memory_space<vmem>>) attributes {dimension_semantics = [#tpu.dimension_semantics<parallel>], iteration_bounds = array<i64: 1>, scalar_prefetch = 0 : i64, scratch_operands = 3 : i64, tpu.core_type = #tpu.core_type<tc>, window_params = [{transform_indices = @transform_0, window_bounds = array<i64: 4, 512>}, {pipeline_mode = #tpu.pipeline_mode<synchronous>, transform_indices = @transform_1, window_bounds = array<i64: 8, 36>}, {pipeline_mode = #tpu.pipeline_mode<synchronous>, transform_indices = @transform_2, window_bounds = array<i64: 8, 478>}, {pipeline_mode = #tpu.pipeline_mode<synchronous>, transform_indices = @transform_3, window_bounds = array<i64: 8, 478>}, {pipeline_mode = #tpu.pipeline_mode<synchronous>, transform_indices = @transform_4, window_bounds = array<i64: 8, 72>}, {pipeline_mode = #tpu.pipeline_mode<synchronous>, transform_indices = @transform_5, window_bounds = array<i64: 8, 444>}, {pipeline_mode = #tpu.pipeline_mode<synchronous>, transform_indices = @transform_6, window_bounds = array<i64: 8, 444>}, {pipeline_mode = #tpu.pipeline_mode<synchronous>, transform_indices = @transform_7, window_bounds = array<i64: 16, 2048>}, {pipeline_mode = #tpu.pipeline_mode<synchronous>, transform_indices = @transform_8, window_bounds = array<i64: 1, 16>}, {pipeline_mode = #tpu.pipeline_mode<synchronous>, transform_indices = @transform_9, window_bounds = array<i64: 1, 16>}, {transform_indices = @transform_10, window_bounds = array<i64: 1, 2, 16>}]} {
    %c0 = arith.constant 0 : index
    %c0_0 = arith.constant 0 : index
    %0 = vector.load %arg1[%c0, %c0_0] : memref<4x512xf32, #tpu.memory_space<vmem>>, vector<4x512xf32>
    %1 = vector.extract_strided_slice %0 {offsets = [0, 0], sizes = [4, 478], strides = [1, 1]} : vector<4x512xf32> to vector<4x478xf32>
    %c0_1 = arith.constant 0 : index
    %c0_2 = arith.constant 0 : index
    %2 = vector.load %arg12[%c0_1, %c0_2] : memref<36x478xf32, #tpu.memory_space<vmem>>, vector<4x478xf32>
    tpu.vector_store %arg12[%c0_1, %c0_2], %1 {strides = array<i32>} : memref<36x478xf32, #tpu.memory_space<vmem>>, vector<4x478xf32>,
    %3 = vector.extract_strided_slice %0 {offsets = [0, 1], sizes = [4, 478], strides = [1, 1]} : vector<4x512xf32> to vector<4x478xf32>
    %c4 = arith.constant 4 : index
    %c0_3 = arith.constant 0 : index
    %4 = vector.load %arg12[%c4, %c0_3] : memref<36x478xf32, #tpu.memory_space<vmem>>, vector<4x478xf32>
    tpu.vector_store %arg12[%c4, %c0_3], %3 {strides = array<i32>} : memref<36x478xf32, #tpu.memory_space<vmem>>, vector<4x478xf32>,
    %5 = vector.extract_strided_slice %0 {offsets = [0, 2], sizes = [4, 478], strides = [1, 1]} : vector<4x512xf32> to vector<4x478xf32>
    %c8 = arith.constant 8 : index
    %c0_4 = arith.constant 0 : index
    %6 = vector.load %arg12[%c8, %c0_4] : memref<36x478xf32, #tpu.memory_space<vmem>>, vector<4x478xf32>
    tpu.vector_store %arg12[%c8, %c0_4], %5 {strides = array<i32>} : memref<36x478xf32, #tpu.memory_space<vmem>>, vector<4x478xf32>,
    %7 = vector.extract_strided_slice %0 {offsets = [0, 16], sizes = [4, 478], strides = [1, 1]} : vector<4x512xf32> to vector<4x478xf32>
    %c12 = arith.constant 12 : index
    %c0_5 = arith.constant 0 : index
    %8 = vector.load %arg12[%c12, %c0_5] : memref<36x478xf32, #tpu.memory_space<vmem>>, vector<4x478xf32>
    tpu.vector_store %arg12[%c12, %c0_5], %7 {strides = array<i32>} : memref<36x478xf32, #tpu.memory_space<vmem>>, vector<4x478xf32>,
    %9 = vector.extract_strided_slice %0 {offsets = [0, 17], sizes = [4, 478], strides = [1, 1]} : vector<4x512xf32> to vector<4x478xf32>
    %c16 = arith.constant 16 : index
    %c0_6 = arith.constant 0 : index
    %10 = vector.load %arg12[%c16, %c0_6] : memref<36x478xf32, #tpu.memory_space<vmem>>, vector<4x478xf32>
    tpu.vector_store %arg12[%c16, %c0_6], %9 {strides = array<i32>} : memref<36x478xf32, #tpu.memory_space<vmem>>, vector<4x478xf32>,
    %11 = vector.extract_strided_slice %0 {offsets = [0, 18], sizes = [4, 478], strides = [1, 1]} : vector<4x512xf32> to vector<4x478xf32>
    %c20 = arith.constant 20 : index
    %c0_7 = arith.constant 0 : index
    %12 = vector.load %arg12[%c20, %c0_7] : memref<36x478xf32, #tpu.memory_space<vmem>>, vector<4x478xf32>
    tpu.vector_store %arg12[%c20, %c0_7], %11 {strides = array<i32>} : memref<36x478xf32, #tpu.memory_space<vmem>>, vector<4x478xf32>,
    %13 = vector.extract_strided_slice %0 {offsets = [0, 32], sizes = [4, 478], strides = [1, 1]} : vector<4x512xf32> to vector<4x478xf32>
    %c24 = arith.constant 24 : index
    %c0_8 = arith.constant 0 : index
    %14 = vector.load %arg12[%c24, %c0_8] : memref<36x478xf32, #tpu.memory_space<vmem>>, vector<4x478xf32>
    tpu.vector_store %arg12[%c24, %c0_8], %13 {strides = array<i32>} : memref<36x478xf32, #tpu.memory_space<vmem>>, vector<4x478xf32>,
    %15 = vector.extract_strided_slice %0 {offsets = [0, 33], sizes = [4, 478], strides = [1, 1]} : vector<4x512xf32> to vector<4x478xf32>
    %c28 = arith.constant 28 : index
    %c0_9 = arith.constant 0 : index
    %16 = vector.load %arg12[%c28, %c0_9] : memref<36x478xf32, #tpu.memory_space<vmem>>, vector<4x478xf32>
    tpu.vector_store %arg12[%c28, %c0_9], %15 {strides = array<i32>} : memref<36x478xf32, #tpu.memory_space<vmem>>, vector<4x478xf32>,
    %17 = vector.extract_strided_slice %0 {offsets = [0, 34], sizes = [4, 478], strides = [1, 1]} : vector<4x512xf32> to vector<4x478xf32>
    %c32 = arith.constant 32 : index
    %c0_10 = arith.constant 0 : index
    %18 = vector.load %arg12[%c32, %c0_10] : memref<36x478xf32, #tpu.memory_space<vmem>>, vector<4x478xf32>
    tpu.vector_store %arg12[%c32, %c0_10], %17 {strides = array<i32>} : memref<36x478xf32, #tpu.memory_space<vmem>>, vector<4x478xf32>,
    %c0_11 = arith.constant 0 : index
    %c0_12 = arith.constant 0 : index
    %19 = vector.load %arg2[%c0_11, %c0_12] : memref<8x36xf32, #tpu.memory_space<vmem>>, vector<8x36xf32>
    %c0_13 = arith.constant 0 : index
    %c0_14 = arith.constant 0 : index
    %20 = vector.load %arg12[%c0_13, %c0_14] : memref<36x478xf32, #tpu.memory_space<vmem>>, vector<36x478xf32>
    %cst = arith.constant dense<0.000000e+00> : vector<8x478xf32>
    %21 = tpu.matmul %19, %20, %cst {dimension_numbers = #tpu.dot_dimension_numbers<[1], [0], [0], [1], [0, 0, 1, 1], [], []>} : vector<8x36xf32>, vector<36x478xf32>, vector<8x478xf32> -> vector<8x478xf32>
    %c0_15 = arith.constant 0 : index
    %c0_16 = arith.constant 0 : index
    %22 = vector.load %arg3[%c0_15, %c0_16] : memref<8x478xf32, #tpu.memory_space<vmem>>, vector<8x478xf32>
    %23 = arith.mulf %21, %22 : vector<8x478xf32>
    %c0_17 = arith.constant 0 : index
    %c0_18 = arith.constant 0 : index
    %24 = vector.load %arg4[%c0_17, %c0_18] : memref<8x478xf32, #tpu.memory_space<vmem>>, vector<8x478xf32>
    %25 = arith.addf %23, %24 : vector<8x478xf32>
    %cst_19 = arith.constant 0.000000e+00 : f32
    %26 = vector.broadcast %cst_19 : f32 to vector<8x478xf32>
    %27 = arith.maximumf %25, %26 : vector<8x478xf32>
    %28 = vector.extract_strided_slice %27 {offsets = [0, 0], sizes = [8, 444], strides = [1, 1]} : vector<8x478xf32> to vector<8x444xf32>
    %c0_20 = arith.constant 0 : index
    %c0_21 = arith.constant 0 : index
    %29 = vector.load %arg13[%c0_20, %c0_21] : memref<72x444xf32, #tpu.memory_space<vmem>>, vector<8x444xf32>
    tpu.vector_store %arg13[%c0_20, %c0_21], %28 {strides = array<i32>} : memref<72x444xf32, #tpu.memory_space<vmem>>, vector<8x444xf32>,
    %30 = vector.extract_strided_slice %27 {offsets = [0, 1], sizes = [8, 444], strides = [1, 1]} : vector<8x478xf32> to vector<8x444xf32>
    %c8_22 = arith.constant 8 : index
    %c0_23 = arith.constant 0 : index
    %31 = vector.load %arg13[%c8_22, %c0_23] : memref<72x444xf32, #tpu.memory_space<vmem>>, vector<8x444xf32>
    tpu.vector_store %arg13[%c8_22, %c0_23], %30 {strides = array<i32>} : memref<72x444xf32, #tpu.memory_space<vmem>>, vector<8x444xf32>,
    %32 = vector.extract_strided_slice %27 {offsets = [0, 2], sizes = [8, 444], strides = [1, 1]} : vector<8x478xf32> to vector<8x444xf32>
    %c16_24 = arith.constant 16 : index
    %c0_25 = arith.constant 0 : index
    %33 = vector.load %arg13[%c16_24, %c0_25] : memref<72x444xf32, #tpu.memory_space<vmem>>, vector<8x444xf32>
    tpu.vector_store %arg13[%c16_24, %c0_25], %32 {strides = array<i32>} : memref<72x444xf32, #tpu.memory_space<vmem>>, vector<8x444xf32>,
    %34 = vector.extract_strided_slice %27 {offsets = [0, 16], sizes = [8, 444], strides = [1, 1]} : vector<8x478xf32> to vector<8x444xf32>
    %c24_26 = arith.constant 24 : index
    %c0_27 = arith.constant 0 : index
    %35 = vector.load %arg13[%c24_26, %c0_27] : memref<72x444xf32, #tpu.memory_space<vmem>>, vector<8x444xf32>
    tpu.vector_store %arg13[%c24_26, %c0_27], %34 {strides = array<i32>} : memref<72x444xf32, #tpu.memory_space<vmem>>, vector<8x444xf32>,
    %36 = vector.extract_strided_slice %27 {offsets = [0, 17], sizes = [8, 444], strides = [1, 1]} : vector<8x478xf32> to vector<8x444xf32>
    %c32_28 = arith.constant 32 : index
    %c0_29 = arith.constant 0 : index
    %37 = vector.load %arg13[%c32_28, %c0_29] : memref<72x444xf32, #tpu.memory_space<vmem>>, vector<8x444xf32>
    tpu.vector_store %arg13[%c32_28, %c0_29], %36 {strides = array<i32>} : memref<72x444xf32, #tpu.memory_space<vmem>>, vector<8x444xf32>,
    %38 = vector.extract_strided_slice %27 {offsets = [0, 18], sizes = [8, 444], strides = [1, 1]} : vector<8x478xf32> to vector<8x444xf32>
    %c40 = arith.constant 40 : index
    %c0_30 = arith.constant 0 : index
    %39 = vector.load %arg13[%c40, %c0_30] : memref<72x444xf32, #tpu.memory_space<vmem>>, vector<8x444xf32>
    tpu.vector_store %arg13[%c40, %c0_30], %38 {strides = array<i32>} : memref<72x444xf32, #tpu.memory_space<vmem>>, vector<8x444xf32>,
    %40 = vector.extract_strided_slice %27 {offsets = [0, 32], sizes = [8, 444], strides = [1, 1]} : vector<8x478xf32> to vector<8x444xf32>
    %c48 = arith.constant 48 : index
    %c0_31 = arith.constant 0 : index
    %41 = vector.load %arg13[%c48, %c0_31] : memref<72x444xf32, #tpu.memory_space<vmem>>, vector<8x444xf32>
    tpu.vector_store %arg13[%c48, %c0_31], %40 {strides = array<i32>} : memref<72x444xf32, #tpu.memory_space<vmem>>, vector<8x444xf32>,
    %42 = vector.extract_strided_slice %27 {offsets = [0, 33], sizes = [8, 444], strides = [1, 1]} : vector<8x478xf32> to vector<8x444xf32>
    %c56 = arith.constant 56 : index
    %c0_32 = arith.constant 0 : index
    %43 = vector.load %arg13[%c56, %c0_32] : memref<72x444xf32, #tpu.memory_space<vmem>>, vector<8x444xf32>
    tpu.vector_store %arg13[%c56, %c0_32], %42 {strides = array<i32>} : memref<72x444xf32, #tpu.memory_space<vmem>>, vector<8x444xf32>,
    %44 = vector.extract_strided_slice %27 {offsets = [0, 34], sizes = [8, 444], strides = [1, 1]} : vector<8x478xf32> to vector<8x444xf32>
    %c64 = arith.constant 64 : index
    %c0_33 = arith.constant 0 : index
    %45 = vector.load %arg13[%c64, %c0_33] : memref<72x444xf32, #tpu.memory_space<vmem>>, vector<8x444xf32>
    tpu.vector_store %arg13[%c64, %c0_33], %44 {strides = array<i32>} : memref<72x444xf32, #tpu.memory_space<vmem>>, vector<8x444xf32>,
    %c0_34 = arith.constant 0 : index
    %c0_35 = arith.constant 0 : index
    %46 = vector.load %arg5[%c0_34, %c0_35] : memref<8x72xf32, #tpu.memory_space<vmem>>, vector<8x72xf32>
    %c0_36 = arith.constant 0 : index
    %c0_37 = arith.constant 0 : index
    %47 = vector.load %arg13[%c0_36, %c0_37] : memref<72x444xf32, #tpu.memory_space<vmem>>, vector<72x444xf32>
    %cst_38 = arith.constant dense<0.000000e+00> : vector<8x444xf32>
    %48 = tpu.matmul %46, %47, %cst_38 {dimension_numbers = #tpu.dot_dimension_numbers<[1], [0], [0], [1], [0, 0, 1, 1], [], []>} : vector<8x72xf32>, vector<72x444xf32>, vector<8x444xf32> -> vector<8x444xf32>
    %c0_39 = arith.constant 0 : index
    %c0_40 = arith.constant 0 : index
    %49 = vector.load %arg6[%c0_39, %c0_40] : memref<8x444xf32, #tpu.memory_space<vmem>>, vector<8x444xf32>
    %50 = arith.mulf %48, %49 : vector<8x444xf32>
    %c0_41 = arith.constant 0 : index
    %c0_42 = arith.constant 0 : index
    %51 = vector.load %arg7[%c0_41, %c0_42] : memref<8x444xf32, #tpu.memory_space<vmem>>, vector<8x444xf32>
    %52 = arith.addf %50, %51 : vector<8x444xf32>
    %cst_43 = arith.constant 0.000000e+00 : f32
    %53 = vector.broadcast %cst_43 : f32 to vector<8x444xf32>
    %54 = arith.maximumf %52, %53 : vector<8x444xf32>
    %cst_44 = arith.constant 0.000000e+00 : f32
    %55 = vector.broadcast %cst_44 : f32 to vector<2x2048xf32>
    %c0_45 = arith.constant 0 : index
    %c0_46 = arith.constant 0 : index
    %56 = vector.load %arg14[%c0_45, %c0_46] : memref<2x2048xf32, #tpu.memory_space<vmem>>, vector<2x2048xf32>
    tpu.vector_store %arg14[%c0_45, %c0_46], %55 {strides = array<i32>} : memref<2x2048xf32, #tpu.memory_space<vmem>>, vector<2x2048xf32>,
    %57 = vector.extract_strided_slice %54 {offsets = [0, 0], sizes = [1, 256], strides = [1, 1]} : vector<8x444xf32> to vector<1x256xf32>
    %c0_47 = arith.constant 0 : index
    %c0_48 = arith.constant 0 : index
    %58 = vector.load %arg14[%c0_47, %c0_48] : memref<2x2048xf32, #tpu.memory_space<vmem>>, vector<1x256xf32>
    tpu.vector_store %arg14[%c0_47, %c0_48], %57 {strides = array<i32>} : memref<2x2048xf32, #tpu.memory_space<vmem>>, vector<1x256xf32>,
    %59 = vector.extract_strided_slice %54 {offsets = [1, 0], sizes = [1, 256], strides = [1, 1]} : vector<8x444xf32> to vector<1x256xf32>
    %c0_49 = arith.constant 0 : index
    %c256 = arith.constant 256 : index
    %60 = vector.load %arg14[%c0_49, %c256] : memref<2x2048xf32, #tpu.memory_space<vmem>>, vector<1x256xf32>
    tpu.vector_store %arg14[%c0_49, %c256], %59 {strides = array<i32>} : memref<2x2048xf32, #tpu.memory_space<vmem>>, vector<1x256xf32>,
    %61 = vector.extract_strided_slice %54 {offsets = [2, 0], sizes = [1, 256], strides = [1, 1]} : vector<8x444xf32> to vector<1x256xf32>
    %c0_50 = arith.constant 0 : index
    %c512 = arith.constant 512 : index
    %62 = vector.load %arg14[%c0_50, %c512] : memref<2x2048xf32, #tpu.memory_space<vmem>>, vector<1x256xf32>
    tpu.vector_store %arg14[%c0_50, %c512], %61 {strides = array<i32>} : memref<2x2048xf32, #tpu.memory_space<vmem>>, vector<1x256xf32>,
    %63 = vector.extract_strided_slice %54 {offsets = [3, 0], sizes = [1, 256], strides = [1, 1]} : vector<8x444xf32> to vector<1x256xf32>
    %c0_51 = arith.constant 0 : index
    %c768 = arith.constant 768 : index
    %64 = vector.load %arg14[%c0_51, %c768] : memref<2x2048xf32, #tpu.memory_space<vmem>>, vector<1x256xf32>
    tpu.vector_store %arg14[%c0_51, %c768], %63 {strides = array<i32>} : memref<2x2048xf32, #tpu.memory_space<vmem>>, vector<1x256xf32>,
    %65 = vector.extract_strided_slice %54 {offsets = [4, 0], sizes = [1, 256], strides = [1, 1]} : vector<8x444xf32> to vector<1x256xf32>
    %c0_52 = arith.constant 0 : index
    %c1024 = arith.constant 1024 : index
    %66 = vector.load %arg14[%c0_52, %c1024] : memref<2x2048xf32, #tpu.memory_space<vmem>>, vector<1x256xf32>
    tpu.vector_store %arg14[%c0_52, %c1024], %65 {strides = array<i32>} : memref<2x2048xf32, #tpu.memory_space<vmem>>, vector<1x256xf32>,
    %67 = vector.extract_strided_slice %54 {offsets = [5, 0], sizes = [1, 256], strides = [1, 1]} : vector<8x444xf32> to vector<1x256xf32>
    %c0_53 = arith.constant 0 : index
    %c1280 = arith.constant 1280 : index
    %68 = vector.load %arg14[%c0_53, %c1280] : memref<2x2048xf32, #tpu.memory_space<vmem>>, vector<1x256xf32>
    tpu.vector_store %arg14[%c0_53, %c1280], %67 {strides = array<i32>} : memref<2x2048xf32, #tpu.memory_space<vmem>>, vector<1x256xf32>,
    %69 = vector.extract_strided_slice %54 {offsets = [6, 0], sizes = [1, 256], strides = [1, 1]} : vector<8x444xf32> to vector<1x256xf32>
    %c0_54 = arith.constant 0 : index
    %c1536 = arith.constant 1536 : index
    %70 = vector.load %arg14[%c0_54, %c1536] : memref<2x2048xf32, #tpu.memory_space<vmem>>, vector<1x256xf32>
    tpu.vector_store %arg14[%c0_54, %c1536], %69 {strides = array<i32>} : memref<2x2048xf32, #tpu.memory_space<vmem>>, vector<1x256xf32>,
    %71 = vector.extract_strided_slice %54 {offsets = [7, 0], sizes = [1, 256], strides = [1, 1]} : vector<8x444xf32> to vector<1x256xf32>
    %c0_55 = arith.constant 0 : index
    %c1792 = arith.constant 1792 : index
    %72 = vector.load %arg14[%c0_55, %c1792] : memref<2x2048xf32, #tpu.memory_space<vmem>>, vector<1x256xf32>
    tpu.vector_store %arg14[%c0_55, %c1792], %71 {strides = array<i32>} : memref<2x2048xf32, #tpu.memory_space<vmem>>, vector<1x256xf32>,
    %73 = vector.extract_strided_slice %54 {offsets = [0, 256], sizes = [1, 188], strides = [1, 1]} : vector<8x444xf32> to vector<1x188xf32>
    %c1 = arith.constant 1 : index
    %c0_56 = arith.constant 0 : index
    %74 = vector.load %arg14[%c1, %c0_56] : memref<2x2048xf32, #tpu.memory_space<vmem>>, vector<1x188xf32>
    tpu.vector_store %arg14[%c1, %c0_56], %73 {strides = array<i32>} : memref<2x2048xf32, #tpu.memory_space<vmem>>, vector<1x188xf32>,
    %75 = vector.extract_strided_slice %54 {offsets = [1, 256], sizes = [1, 188], strides = [1, 1]} : vector<8x444xf32> to vector<1x188xf32>
    %c1_57 = arith.constant 1 : index
    %c256_58 = arith.constant 256 : index
    %76 = vector.load %arg14[%c1_57, %c256_58] : memref<2x2048xf32, #tpu.memory_space<vmem>>, vector<1x188xf32>
    tpu.vector_store %arg14[%c1_57, %c256_58], %75 {strides = array<i32>} : memref<2x2048xf32, #tpu.memory_space<vmem>>, vector<1x188xf32>,
    %77 = vector.extract_strided_slice %54 {offsets = [2, 256], sizes = [1, 188], strides = [1, 1]} : vector<8x444xf32> to vector<1x188xf32>
    %c1_59 = arith.constant 1 : index
    %c512_60 = arith.constant 512 : index
    %78 = vector.load %arg14[%c1_59, %c512_60] : memref<2x2048xf32, #tpu.memory_space<vmem>>, vector<1x188xf32>
    tpu.vector_store %arg14[%c1_59, %c512_60], %77 {strides = array<i32>} : memref<2x2048xf32, #tpu.memory_space<vmem>>, vector<1x188xf32>,
    %79 = vector.extract_strided_slice %54 {offsets = [3, 256], sizes = [1, 188], strides = [1, 1]} : vector<8x444xf32> to vector<1x188xf32>
    %c1_61 = arith.constant 1 : index
    %c768_62 = arith.constant 768 : index
    %80 = vector.load %arg14[%c1_61, %c768_62] : memref<2x2048xf32, #tpu.memory_space<vmem>>, vector<1x188xf32>
    tpu.vector_store %arg14[%c1_61, %c768_62], %79 {strides = array<i32>} : memref<2x2048xf32, #tpu.memory_space<vmem>>, vector<1x188xf32>,
    %81 = vector.extract_strided_slice %54 {offsets = [4, 256], sizes = [1, 188], strides = [1, 1]} : vector<8x444xf32> to vector<1x188xf32>
    %c1_63 = arith.constant 1 : index
    %c1024_64 = arith.constant 1024 : index
    %82 = vector.load %arg14[%c1_63, %c1024_64] : memref<2x2048xf32, #tpu.memory_space<vmem>>, vector<1x188xf32>
    tpu.vector_store %arg14[%c1_63, %c1024_64], %81 {strides = array<i32>} : memref<2x2048xf32, #tpu.memory_space<vmem>>, vector<1x188xf32>,
    %83 = vector.extract_strided_slice %54 {offsets = [5, 256], sizes = [1, 188], strides = [1, 1]} : vector<8x444xf32> to vector<1x188xf32>
    %c1_65 = arith.constant 1 : index
    %c1280_66 = arith.constant 1280 : index
    %84 = vector.load %arg14[%c1_65, %c1280_66] : memref<2x2048xf32, #tpu.memory_space<vmem>>, vector<1x188xf32>
    tpu.vector_store %arg14[%c1_65, %c1280_66], %83 {strides = array<i32>} : memref<2x2048xf32, #tpu.memory_space<vmem>>, vector<1x188xf32>,
    %85 = vector.extract_strided_slice %54 {offsets = [6, 256], sizes = [1, 188], strides = [1, 1]} : vector<8x444xf32> to vector<1x188xf32>
    %c1_67 = arith.constant 1 : index
    %c1536_68 = arith.constant 1536 : index
    %86 = vector.load %arg14[%c1_67, %c1536_68] : memref<2x2048xf32, #tpu.memory_space<vmem>>, vector<1x188xf32>
    tpu.vector_store %arg14[%c1_67, %c1536_68], %85 {strides = array<i32>} : memref<2x2048xf32, #tpu.memory_space<vmem>>, vector<1x188xf32>,
    %87 = vector.extract_strided_slice %54 {offsets = [7, 256], sizes = [1, 188], strides = [1, 1]} : vector<8x444xf32> to vector<1x188xf32>
    %c1_69 = arith.constant 1 : index
    %c1792_70 = arith.constant 1792 : index
    %88 = vector.load %arg14[%c1_69, %c1792_70] : memref<2x2048xf32, #tpu.memory_space<vmem>>, vector<1x188xf32>
    tpu.vector_store %arg14[%c1_69, %c1792_70], %87 {strides = array<i32>} : memref<2x2048xf32, #tpu.memory_space<vmem>>, vector<1x188xf32>,
    %c0_71 = arith.constant 0 : index
    %c0_72 = arith.constant 0 : index
    %89 = vector.load %arg14[%c0_71, %c0_72] : memref<2x2048xf32, #tpu.memory_space<vmem>>, vector<2x2048xf32>
    %c0_73 = arith.constant 0 : index
    %c0_74 = arith.constant 0 : index
    %90 = vector.load %arg8[%c0_73, %c0_74] : memref<16x2048xf32, #tpu.memory_space<vmem>>, vector<16x2048xf32>
    %cst_75 = arith.constant dense<0.000000e+00> : vector<2x16xf32>
    %91 = tpu.matmul %89, %90, %cst_75 {dimension_numbers = #tpu.dot_dimension_numbers<[1], [1], [0], [0], [0, 0, 1, 0], [], []>} : vector<2x2048xf32>, vector<16x2048xf32>, vector<2x16xf32> -> vector<2x16xf32>
    %c0_76 = arith.constant 0 : index
    %c0_77 = arith.constant 0 : index
    %92 = vector.load %arg9[%c0_76, %c0_77] : memref<1x16xf32, #tpu.memory_space<vmem>>, vector<1x16xf32>
    %93 = vector.broadcast %92 : vector<1x16xf32> to vector<2x16xf32>
    %94 = arith.addf %91, %93 : vector<2x16xf32>
    %cst_78 = arith.constant 0.000000e+00 : f32
    %95 = vector.broadcast %cst_78 : f32 to vector<2x16xf32>
    %96 = arith.maximumf %94, %95 : vector<2x16xf32>
    %97 = math.absf %94 : vector<2x16xf32>
    %cst_79 = arith.constant 0.000000e+00 : f32
    %98 = vector.broadcast %cst_79 : f32 to vector<2x16xf32>
    %99 = arith.subf %98, %97 : vector<2x16xf32>
    %100 = math.exp %99 : vector<2x16xf32>
    %101 = math.log1p %100 : vector<2x16xf32>
    %102 = arith.addf %96, %101 : vector<2x16xf32>
    %c0_80 = arith.constant 0 : index
    %c0_81 = arith.constant 0 : index
    %103 = vector.load %arg10[%c0_80, %c0_81] : memref<1x16xf32, #tpu.memory_space<vmem>>, vector<1x16xf32>
    %104 = vector.broadcast %103 : vector<1x16xf32> to vector<2x16xf32>
    %105 = arith.mulf %102, %104 : vector<2x16xf32>
    %c0_82 = arith.constant 0 : index
    %c0_83 = arith.constant 0 : index
    %c0_84 = arith.constant 0 : index
    %106 = vector.load %arg11[%c0_82, %c0_83, %c0_84] : memref<1x2x16xf32, #tpu.memory_space<vmem>>, vector<1x2x16xf32>
    %107 = vector.shape_cast %106 : vector<1x2x16xf32> to vector<2x16xf32>
    %108 = vector.shape_cast %105 : vector<2x16xf32> to vector<1x2x16xf32>
    tpu.vector_store %arg11[%c0_82, %c0_83, %c0_84], %108 {strides = array<i32>} : memref<1x2x16xf32, #tpu.memory_space<vmem>>, vector<1x2x16xf32>,
    return
  }
  func.func @transform_0(%arg0: i32) -> (i32, i32) {
    %c0_i32 = arith.constant 0 : i32
    %c0_i32_0 = arith.constant 0 : i32
    return %c0_i32, %arg0 : i32, i32
  }
  func.func @transform_1(%arg0: i32) -> (i32, i32) {
    %c0_i32 = arith.constant 0 : i32
    %c0_i32_0 = arith.constant 0 : i32
    %c0_i32_1 = arith.constant 0 : i32
    return %c0_i32, %c0_i32_0 : i32, i32
  }
  func.func @transform_2(%arg0: i32) -> (i32, i32) {
    %c0_i32 = arith.constant 0 : i32
    %c0_i32_0 = arith.constant 0 : i32
    %c0_i32_1 = arith.constant 0 : i32
    return %c0_i32, %c0_i32_0 : i32, i32
  }
  func.func @transform_3(%arg0: i32) -> (i32, i32) {
    %c0_i32 = arith.constant 0 : i32
    %c0_i32_0 = arith.constant 0 : i32
    %c0_i32_1 = arith.constant 0 : i32
    return %c0_i32, %c0_i32_0 : i32, i32
  }
  func.func @transform_4(%arg0: i32) -> (i32, i32) {
    %c0_i32 = arith.constant 0 : i32
    %c0_i32_0 = arith.constant 0 : i32
    %c0_i32_1 = arith.constant 0 : i32
    return %c0_i32, %c0_i32_0 : i32, i32
  }
  func.func @transform_5(%arg0: i32) -> (i32, i32) {
    %c0_i32 = arith.constant 0 : i32
    %c0_i32_0 = arith.constant 0 : i32
    %c0_i32_1 = arith.constant 0 : i32
    return %c0_i32, %c0_i32_0 : i32, i32
  }
  func.func @transform_6(%arg0: i32) -> (i32, i32) {
    %c0_i32 = arith.constant 0 : i32
    %c0_i32_0 = arith.constant 0 : i32
    %c0_i32_1 = arith.constant 0 : i32
    return %c0_i32, %c0_i32_0 : i32, i32
  }
  func.func @transform_7(%arg0: i32) -> (i32, i32) {
    %c0_i32 = arith.constant 0 : i32
    %c0_i32_0 = arith.constant 0 : i32
    %c0_i32_1 = arith.constant 0 : i32
    return %c0_i32, %c0_i32_0 : i32, i32
  }
  func.func @transform_8(%arg0: i32) -> (i32, i32) {
    %c0_i32 = arith.constant 0 : i32
    %c0_i32_0 = arith.constant 0 : i32
    %c0_i32_1 = arith.constant 0 : i32
    return %c0_i32, %c0_i32_0 : i32, i32
  }
  func.func @transform_9(%arg0: i32) -> (i32, i32) {
    %c0_i32 = arith.constant 0 : i32
    %c0_i32_0 = arith.constant 0 : i32
    %c0_i32_1 = arith.constant 0 : i32
    return %c0_i32, %c0_i32_0 : i32, i32
  }
  func.func @transform_10(%arg0: i32) -> (i32, i32, i32) {
    %c0_i32 = arith.constant 0 : i32
    %c0_i32_0 = arith.constant 0 : i32
    %c0_i32_1 = arith.constant 0 : i32
    return %arg0, %c0_i32, %c0_i32_0 : i32, i32, i32
  }
}

</mosaic_0001>

<bundles_post_ra>
// kernel: pallas_forward.1
= control target key start
LH: loop header
LB: loop body
LE: loop exit
PB: predicated region body
PF: predicated region fallthrough
CT: control target
= control target key end

     0   :  { %15 = vsyncpa [#allocation6], 0  ;;  %s2279_s0 = inlined_call_operand.vmem [shape: f32[4,512], index: 0, kind: input, shape index: {}]   ;;  %s2280_s1 = inlined_call_operand.vmem [shape: f32[8,36], index: 1, kind: input, shape index: {}]   ;;  %s2281_s2 = inlined_call_operand.vmem [shape: f32[8,478], index: 2, kind: input, shape index: {}]   ;;  %s2282_s3 = inlined_call_operand.vmem [shape: f32[8,478], index: 3, kind: input, shape index: {}]   ;;  %s2283_s4 = inlined_call_operand.vmem [shape: f32[8,72], index: 4, kind: input, shape index: {}]   ;;  %s2284_s5 = inlined_call_operand.vmem [shape: f32[8,444], index: 5, kind: input, shape index: {}]   ;;  %s2285_s6 = inlined_call_operand.vmem [shape: f32[8,444], index: 6, kind: input, shape index: {}]   ;;  %s2286_s7 = inlined_call_operand.hbm [shape: f32[16,2048], index: 7, kind: input, shape index: {}]   ;;  %s2287_s8 = inlined_call_operand.vmem [shape: f32[1,16], index: 8, kind: input, shape index: {}]   ;;  %s2288_s9 = inlined_call_operand.vmem [shape: f32[1,16], index: 9, kind: input, shape index: {}]   ;;  %s2289_s10 = inlined_call_operand.hbm [shape: f32[1,2,16], index: 10, kind: output, shape index: {}]  }
   0x1   :  { %16 = vsyncpa [#allocation7], 0  ;;  %s1862_s13 = smov [#allocation5]   ;;  %s1814_s17 = scalar_lea.hbm %s2286_s7, 4096 }
   0x2   :  { %s36_s14 = sshll.u32 %s1862_s13, 4  ;;  %p1815_p0 = scmp.ne.s32.totalorder %s2286_s7, %s1814_s17  ;;  %s37_s14 = int_to_ptr.vmem [resolvable:$true] %s36_s14 }
   0x3   :  { %p1818_p1 = scmp.lt.u32.totalorder %s1814_s17, %s2286_s7 }
   0x5   :  { %p1820_p2 = pnand %p1818_p1, %p1815_p0 }
   0x7   :  { %1823 = shalt.err (!%p1820_p2)
}
   0x8   :  { %s1824_s22 = scalar_lea.vmem %s37_s14, 4096  ;;  %p1829_p4 = scmp.lt.s32.totalorder %s37_s14, %s37_s14 }
   0x9   :  { %p1825_p3 = scmp.ne.s32.totalorder %s37_s14, %s1824_s22  ;;  %p1830_p5 = scmp.lt.s32.totalorder %s1824_s22, %s1824_s22 }
   0xb   :  { %p1831_p6 = por %p1830_p5, %p1829_p4 }
   0xd   :  { %p1832_p7 = pnand %p1831_p6, %p1825_p3 }
   0xf   :  { %1835 = shalt.err (!%p1832_p7)
}
  0x10   :  { %s1863_s23 = smov 2048   ;;  %s1864_s24 = smov 128  }
  0x11   :  { %42 = dma.hbm_to_vmem [thread:$0]  %s2286_s7, 4096, %s37_s14, [#allocation6], %s1863_s23, %s1863_s23, %s1864_s24  }
  0x12   :  { %1858 = dma.done.wait [#allocation6], 4096  }
  0x13   :  { %1859 = vsyncadd [#allocation6], 4294963200  ;;  %v51_v0 = vld [vmem:[%s2279_s0 + $0x8] sm:$0xff]  ;;  %v50_v1 = vld [vmem:[%s2279_s0] sm:$0xff]  ;;  %s1865_s11 = smov 126   ;;  %s1866_s12 = smov 127  }
  0x14   :  { %90 = vrot.lane.b32.xlu1 %v51_v0, %s1865_s11  ;;  %60 = vst [vmem:[#allocation2 + $0x10] sm:$0xf] %v51_v0  ;;  %67 = vrot.lane.b32.xlu0 %v50_v1, %s1866_s12  ;;  %58 = vst [vmem:[#allocation2] sm:$0xf] %v50_v1  ;;  %v54_v2 = vcombine.high %v50_v1, %v50_v1  ;;  %s1867_s7 = smov 112   ;;  %v64_v3 = vcombine.low %v51_v0, %v51_v0  ;;  %s1868_s0 = smov 111  }
  0x15   :  { %v63_v4 = vcombine.low %v50_v1, %v50_v1  ;;  %s1869_s13 = smov 110   ;;  %s1870_s14 = smov 96   ;;  %v55_v5 = vcombine.high %v51_v0, %v51_v0  ;;  %vm61_vm0 = vcmask 764928   ;;  %v1873_v6 = vmov 0.0  }
  0x16   :  { %59 = vst [vmem:[#allocation2 + $0x8] sm:$0xf] %v54_v2  ;;  %s1871_s15 = smov 95   ;;  %s1872_s16 = smov 94   ;;  %790 = vst [vmem:[#allocation4] sm:$0xff] %v1873_v6  ;;  %328 = vmatprep.mubr.f32.mxu1 %v1873_v6  ;;  %vm94_vm1 = vcmask 1031168  }
  0x17   :  { %62 = vst.msk [vmem:[#allocation2 + $0x18] sm:$0xf] %vm61_vm0, %v55_v5  ;;  %791 = vst [vmem:[#allocation4 + $0x8] sm:$0xff] %v1873_v6  ;;  %vm73_vm2 = vcmask 1039360   ;;  %vm114_vm3 = vcmask 916480   ;;  %vm134_vm4 = vcmask 908288  }
  0x18   :  { %108 = vrot.lane.b32.xlu0 %v50_v1, %s1867_s7  ;;  %88 = vrot.lane.b32.xlu1 %v54_v2, %s1865_s11  ;;  %792 = vst [vmem:[#allocation4 + $0x10] sm:$0xff] %v1873_v6  ;;  %793 = vst [vmem:[#allocation4 + $0x18] sm:$0xff] %v1873_v6  ;;  %vm154_vm5 = vcmask 900096   ;;  %vm174_vm6 = vcmask 785408   ;;  %vm194_vm7 = vcmask 777216   ;;  %vm214_vm8 = vcmask 769024  }
  0x19   :  { %vm84_vm9 = vcmask 769028   ;;  %vm251_vm10 = vcmask 1043456   ;;  %vm247_vm11 = vcmask 293888   ;;  %vm429_vm12 = vcmask 490496   ;;  %s1876_s27 = smov [#allocation8]  }
  0x1a   :  { %vm624_vm13 = vcmask 588800   ;;  %s1673_s28 = sshll.u32 %s1876_s27, 4  ;;  %s1674_s28 = int_to_ptr.vmem [resolvable:$true] %s1673_s28 }
  0x1b   :  { %s1836_s29 = scalar_lea.vmem %s1674_s28, 32  ;;  %p1841_p9 = scmp.lt.s32.totalorder %s1674_s28, %s1674_s28 }
  0x1c   :  { %69 = vrot.lane.b32.xlu0 %v64_v3, %s1866_s12  ;;  %110 = vrot.lane.b32.xlu1 %v64_v3, %s1867_s7  ;;  %p1837_p8 = scmp.ne.s32.totalorder %s1674_s28, %s1836_s29  ;;  %p1842_p10 = scmp.lt.s32.totalorder %s1836_s29, %s1836_s29 }
  0x1e   :  { %p1843_p11 = por %p1842_p10, %p1841_p9 }
  0x20   :  { %65 = vrot.lane.b32.xlu0 %v63_v4, %s1866_s12  ;;  %86 = vrot.lane.b32.xlu1 %v50_v1, %s1865_s11  ;;  %p1844_p12 = pnand %p1843_p11, %p1837_p8 }
  0x24   :  { %106 = vrot.lane.b32.xlu0 %v63_v4, %s1867_s7  ;;  %128 = vrot.lane.b32.xlu1 %v54_v2, %s1868_s0 }
  0x28   :  { %130 = vrot.lane.b32.xlu0 %v51_v0, %s1868_s0  ;;  %148 = vrot.lane.b32.xlu1 %v50_v1, %s1869_s13 }
  0x2c   :  { %150 = vrot.lane.b32.xlu0 %v64_v3, %s1869_s13  ;;  %168 = vrot.lane.b32.xlu1 %v54_v2, %s1870_s14 }
  0x30   :  { %170 = vrot.lane.b32.xlu0 %v51_v0, %s1870_s14  ;;  %188 = vrot.lane.b32.xlu1 %v50_v1, %s1871_s15 }
  0x34   :  { %190 = vrot.lane.b32.xlu0 %v64_v3, %s1871_s15  ;;  %126 = vrot.lane.b32.xlu1 %v50_v1, %s1868_s0 }
  0x38   :  { %146 = vrot.lane.b32.xlu0 %v63_v4, %s1869_s13  ;;  %166 = vrot.lane.b32.xlu1 %v50_v1, %s1870_s14 }
  0x3c   :  { %186 = vrot.lane.b32.xlu0 %v63_v4, %s1871_s15  ;;  %208 = vrot.lane.b32.xlu1 %v54_v2, %s1872_s16 }
  0x40   :  { %210 = vrot.lane.b32.xlu0 %v51_v0, %s1872_s16  ;;  %71 = vrot.lane.b32.xlu1 %v51_v0, %s1866_s12 }
  0x44   :  { %92 = vrot.lane.b32.xlu0 %v55_v5, %s1865_s11  ;;  %112 = vrot.lane.b32.xlu1 %v51_v0, %s1867_s7 }
  0x48   :  { %206 = vrot.lane.b32.xlu0 %v50_v1, %s1872_s16  ;;  %132 = vrot.lane.b32.xlu1 %v55_v5, %s1868_s0 }
  0x4c   :  { %152 = vrot.lane.b32.xlu0 %v51_v0, %s1869_s13  ;;  %172 = vrot.lane.b32.xlu1 %v55_v5, %s1870_s14 }
  0x50   :  { %192 = vrot.lane.b32.xlu0 %v51_v0, %s1871_s15  ;;  %212 = vrot.lane.b32.xlu1 %v55_v5, %s1872_s16 }
  0x86   :  { %v1988_v7 = vpop.permute.xlu1 %90  ;;  %v68_v8 = vpop.permute.xlu0 %67 }
  0x8a   :  { %v109_v9 = vpop.permute.xlu0 %108  ;;  %v89_v10 = vpop.permute.xlu1 %88 }
  0x8b   :  { %v96_v11 = vsel %vm94_vm1, %v89_v10, %v1988_v7 }
  0x8c   :  { %103 = vst [vmem:[#allocation2 + $0x28] sm:$0xf] %v96_v11 }
  0x8e   :  { %v1992_v12 = vpop.permute.xlu0 %69  ;;  %v1994_v13 = vpop.permute.xlu1 %110 }
  0x8f   :  { %v75_v14 = vsel %vm73_vm2, %v68_v8, %v1992_v12  ;;  %v116_v15 = vsel %vm114_vm3, %v109_v9, %v1994_v13 }
  0x90   :  { %82 = vst [vmem:[#allocation2 + $0x8] sm:$0xf0] %v75_v14  ;;  %123 = vst [vmem:[#allocation2 + $0x28] sm:$0xf0] %v116_v15  ;;  %v226_v14 = vld [vmem:[%s2280_s1] sm:$0xff] }
  0x92   :  { %v66_v16 = vpop.permute.xlu0 %65  ;;  %v87_v17 = vpop.permute.xlu1 %86 }
  0x93   :  { %v74_v18 = vsel %vm73_vm2, %v66_v16, %v68_v8  ;;  %v95_v19 = vsel %vm94_vm1, %v87_v17, %v89_v10 }
  0x94   :  { %81 = vst [vmem:[#allocation2] sm:$0xf0] %v74_v18  ;;  %102 = vst [vmem:[#allocation2 + $0x20] sm:$0xf] %v95_v19 }
  0x96   :  { %v107_v20 = vpop.permute.xlu0 %106  ;;  %v129_v21 = vpop.permute.xlu1 %128 }
  0x97   :  { %v115_v22 = vsel %vm114_vm3, %v107_v20, %v109_v9  ;;  %v228_v23 = vld [vmem:[#allocation2 + $0x8] sm:$0xff] }
  0x98   :  { %v232_v24 = vld [vmem:[#allocation2 + $0x28] sm:$0xff]  ;;  %122 = vst [vmem:[#allocation2 + $0x20] sm:$0xf0] %v115_v22 }
  0x99   :  { %v1692_v25 = vpack.c.bf16 %v232_v24, %v228_v23 }
  0x9a   :  { %v2003_v26 = vpop.permute.xlu0 %130  ;;  %v149_v27 = vpop.permute.xlu1 %148 }
  0x9b   :  { %1693 = vmatprep.subr.bf16.mxu1 %v1692_v25  ;;  %v136_v28 = vsel %vm134_vm4, %v129_v21, %v2003_v26  ;;  %v227_v32 = vld [vmem:[#allocation2] sm:$0xff] }
  0x9c   :  { %143 = vst [vmem:[#allocation2 + $0x48] sm:$0xf] %v136_v28 }
  0x9e   :  { %v2007_v29 = vpop.permute.xlu0 %150  ;;  %v169_v30 = vpop.permute.xlu1 %168 }
  0x9f   :  { %v156_v31 = vsel %vm154_vm5, %v149_v27, %v2007_v29  ;;  %v231_v33 = vld [vmem:[#allocation2 + $0x20] sm:$0xff] }
  0xa0   :  { %163 = vst [vmem:[#allocation2 + $0x48] sm:$0xf0] %v156_v31  ;;  %v1694_v34 = vpack.c.bf16 %v231_v33, %v227_v32  ;;  %v414_v32 = vld [vmem:[%s2282_s3] sm:$0xff] }
  0xa2   :  { %v171_v35 = vpop.permute.xlu0 %170  ;;  %v189_v36 = vpop.permute.xlu1 %188  ;;  %1695 = vmatpush1.bf16.msra.mxu1 %v1694_v34 }
  0xa3   :  { %v176_v37 = vsel %vm174_vm6, %v169_v30, %v171_v35 }
  0xa4   :  { %183 = vst [vmem:[#allocation2 + $0x68] sm:$0xf] %v176_v37 }
  0xa6   :  { %v2012_v38 = vpop.permute.xlu0 %190  ;;  %v127_v39 = vpop.permute.xlu1 %126 }
  0xa7   :  { %v196_v40 = vsel %vm194_vm7, %v189_v36, %v2012_v38  ;;  %v135_v41 = vsel %vm134_vm4, %v127_v39, %v129_v21  ;;  %v236_v49 = vld [vmem:[#allocation2 + $0x48] sm:$0xff] }
  0xa8   :  { %203 = vst [vmem:[#allocation2 + $0x68] sm:$0xf0] %v196_v40  ;;  %142 = vst [vmem:[#allocation2 + $0x40] sm:$0xf] %v135_v41  ;;  %v408_v41 = vld [vmem:[%s2281_s2 + $0x10] sm:$0xff] }
  0xaa   :  { %v147_v42 = vpop.permute.xlu0 %146  ;;  %v167_v43 = vpop.permute.xlu1 %166 }
  0xab   :  { %v155_v44 = vsel %vm154_vm5, %v147_v42, %v149_v27  ;;  %v175_v45 = vsel %vm174_vm6, %v167_v43, %v169_v30  ;;  %v407_v30 = vld [vmem:[%s2281_s2 + $0x8] sm:$0xff]  ;;  %v409_v42 = vld [vmem:[%s2281_s2 + $0x18] sm:$0xff] }
  0xac   :  { %162 = vst [vmem:[#allocation2 + $0x40] sm:$0xf0] %v155_v44  ;;  %182 = vst [vmem:[#allocation2 + $0x60] sm:$0xf] %v175_v45  ;;  %v416_v44 = vld [vmem:[%s2282_s3 + $0x10] sm:$0xff] }
  0xae   :  { %v187_v46 = vpop.permute.xlu0 %186  ;;  %v209_v47 = vpop.permute.xlu1 %208 }
  0xaf   :  { %v195_v48 = vsel %vm194_vm7, %v187_v46, %v189_v36  ;;  %v240_v50 = vld [vmem:[#allocation2 + $0x68] sm:$0xff] }
  0xb0   :  { %202 = vst [vmem:[#allocation2 + $0x60] sm:$0xf0] %v195_v48  ;;  %v1696_v51 = vpack.c.bf16 %v240_v50, %v236_v49 }
  0xb2   :  { %v211_v52 = vpop.permute.xlu0 %210  ;;  %v72_v53 = vpop.permute.xlu1 %71  ;;  %1697 = vmatprep.subr.bf16.mxu1 %v1696_v51 }
  0xb3   :  { %v216_v54 = vsel %vm214_vm8, %v209_v47, %v211_v52  ;;  %v76_v55 = vsel %vm73_vm2, %v1992_v12, %v72_v53  ;;  %85 = vst.msk [vmem:[#allocation2 + $0x18] sm:$0xf0] %vm84_vm9, %v72_v53  ;;  %v235_v60 = vld [vmem:[#allocation2 + $0x40] sm:$0xff] }
  0xb4   :  { %223 = vst [vmem:[#allocation2 + $0x88] sm:$0xf] %v216_v54  ;;  %83 = vst [vmem:[#allocation2 + $0x10] sm:$0xf0] %v76_v55 }
  0xb6   :  { %v93_v56 = vpop.permute.xlu0 %92  ;;  %v113_v57 = vpop.permute.xlu1 %112 }
  0xb7   :  { %v97_v58 = vsel %vm94_vm1, %v1988_v7, %v93_v56  ;;  %105 = vst.msk [vmem:[#allocation2 + $0x38] sm:$0xf] %vm61_vm0, %v93_v56  ;;  %v117_v59 = vsel %vm114_vm3, %v1994_v13, %v113_v57  ;;  %v239_v61 = vld [vmem:[#allocation2 + $0x60] sm:$0xff] }
  0xb8   :  { %125 = vst.msk [vmem:[#allocation2 + $0x38] sm:$0xf0] %vm84_vm9, %v113_v57  ;;  %104 = vst [vmem:[#allocation2 + $0x30] sm:$0xf] %v97_v58  ;;  %v1698_v62 = vpack.c.bf16 %v239_v61, %v235_v60 }
  0xb9   :  { %124 = vst [vmem:[#allocation2 + $0x30] sm:$0xf0] %v117_v59 }
  0xba   :  { %v207_v63 = vpop.permute.xlu0 %206  ;;  %v133_v0 = vpop.permute.xlu1 %132  ;;  %1699 = vmatpush1.bf16.msra.mxu1 %v1698_v62  ;;  %v230_v9 = vld [vmem:[#allocation2 + $0x18] sm:$0xff] }
  0xbb   :  { %v215_v1 = vsel %vm214_vm8, %v207_v63, %v209_v47  ;;  %v137_v2 = vsel %vm134_vm4, %v2003_v26, %v133_v0  ;;  %145 = vst.msk [vmem:[#allocation2 + $0x58] sm:$0xf] %vm61_vm0, %v133_v0  ;;  %v244_v3 = vld [vmem:[#allocation2 + $0x88] sm:$0xf]  ;;  %v229_v19 = vld [vmem:[#allocation2 + $0x10] sm:$0xff]  ;;  %v417_v47 = vld [vmem:[%s2282_s3 + $0x18] sm:$0xff] }
  0xbc   :  { %222 = vst [vmem:[#allocation2 + $0x80] sm:$0xf] %v215_v1  ;;  %144 = vst [vmem:[#allocation2 + $0x50] sm:$0xf] %v137_v2  ;;  %1682 = vmatprep.subr.msk.mxu1 %vm251_vm10, %v244_v3 }
  0xbe   :  { %v153_v4 = vpop.permute.xlu0 %152  ;;  %v173_v5 = vpop.permute.xlu1 %172 }
  0xbf   :  { %v157_v7 = vsel %vm154_vm5, %v2007_v29, %v153_v4  ;;  %165 = vst.msk [vmem:[#allocation2 + $0x58] sm:$0xf0] %vm84_vm9, %v153_v4  ;;  %v177_v8 = vsel %vm174_vm6, %v171_v35, %v173_v5  ;;  %v234_v10 = vld [vmem:[#allocation2 + $0x38] sm:$0xff]  ;;  %v406_v29 = vld [vmem:[%s2281_s2] sm:$0xff]  ;;  %v415_v35 = vld [vmem:[%s2282_s3 + $0x8] sm:$0xff] }
  0xc0   :  { %185 = vst.msk [vmem:[#allocation2 + $0x78] sm:$0xf] %vm61_vm0, %v173_v5  ;;  %164 = vst [vmem:[#allocation2 + $0x50] sm:$0xf0] %v157_v7  ;;  %v233_v11 = vld [vmem:[#allocation2 + $0x30] sm:$0xff]  ;;  %v1700_v18 = vpack.c.bf16 %v234_v10, %v230_v9 }
  0xc1   :  { %184 = vst [vmem:[#allocation2 + $0x70] sm:$0xf] %v177_v8  ;;  %v1702_v20 = vpack.c.bf16 %v233_v11, %v229_v19 }
  0xc2   :  { %v193_v12 = vpop.permute.xlu0 %192  ;;  %v213_v13 = vpop.permute.xlu1 %212 }
  0xc3   :  { %v197_v15 = vsel %vm194_vm7, %v2012_v38, %v193_v12  ;;  %205 = vst.msk [vmem:[#allocation2 + $0x78] sm:$0xf0] %vm84_vm9, %v193_v12  ;;  %v217_v16 = vsel %vm214_vm8, %v211_v52, %v213_v13  ;;  %v243_v17 = vld [vmem:[#allocation2 + $0x80] sm:$0xf] }
  0xc4   :  { %225 = vst.msk [vmem:[#allocation2 + $0x98] sm:$0xf] %vm61_vm0, %v213_v13  ;;  %204 = vst [vmem:[#allocation2 + $0x70] sm:$0xf0] %v197_v15  ;;  %1683 = vmatpush1.msk.msra.mxu1 %vm251_vm10, %v243_v17 }
  0xc5   :  { %224 = vst [vmem:[#allocation2 + $0x90] sm:$0xf] %v217_v16  ;;  %1684 = vmatmul.mubr.msk.f32.vlgmr.msra.gmra.mrb[0].mxu1 %vm247_vm11, %v226_v14  ;;  %1701 = vmatprep.subr.bf16.mxu1 %v1700_v18 }
  0xc6   :  { %1703 = vmatpush1.bf16.msra.mxu1 %v1702_v20  ;;  %399 = vmatprep.mubr.f32.mxu1 %v1873_v6  ;;  %v238_v21 = vld [vmem:[#allocation2 + $0x58] sm:$0xff] }
  0xc7   :  { %v237_v24 = vld [vmem:[#allocation2 + $0x50] sm:$0xff] }
  0xca   :  { %v242_v22 = vld [vmem:[#allocation2 + $0x78] sm:$0xff] }
  0xcb   :  { %v1704_v23 = vpack.c.bf16 %v242_v22, %v238_v21  ;;  %v241_v25 = vld [vmem:[#allocation2 + $0x70] sm:$0xff]  ;;  %v246_v27 = vld [vmem:[#allocation2 + $0x98] sm:$0xf] }
  0xcc   :  { %v1706_v26 = vpack.c.bf16 %v241_v25, %v237_v24  ;;  %v245_v28 = vld [vmem:[#allocation2 + $0x90] sm:$0xf] }
  0xcd   :  { %1705 = vmatprep.subr.bf16.mxu1 %v1704_v23 }
  0xce   :  { %1707 = vmatpush1.bf16.msra.mxu1 %v1706_v26 }
  0xcf   :  { %1685 = vmatprep.subr.msk.mxu1 %vm251_vm10, %v246_v27 }
  0xd2   :  { %1686 = vmatpush1.msk.msra.mxu1 %vm251_vm10, %v245_v28 }
  0xd3   :  { %1687 = vmatmul.mubr.msk.f32.vlgmr.msra.gmra.mrb[2].mxu1 %vm247_vm11, %v226_v14 }
  0xd4   :  { %692 = vmatprep.mubr.f32.mxu1 %v1873_v6 }
 0x198   :  { %v330_v31 = vpop.f32.mrb[0].mxu1 }
 0x199   :  { %v410_v33 = vmul.f32 %v406_v29, %v330_v31  ;;  %v332_v34 = vpop.f32.mrb[1].mxu1 }
 0x19a   :  { %v411_v36 = vmul.f32 %v407_v30, %v332_v34 }
 0x19b   :  { %v418_v37 = vadd.f32 %v414_v32, %v410_v33 }
 0x19c   :  { %v419_v38 = vadd.f32 %v415_v35, %v411_v36 }
 0x19d   :  { %v2067_v39 = vmax.f32 %v418_v37, 0.0 }
 0x19e   :  { %v2069_v40 = vmax.f32 %v419_v38, 0.0 }
 0x19f   :  { %454 = vrot.lane.b32.xlu1 %v2067_v39, %s1865_s11  ;;  %435 = vrot.lane.b32.xlu0 %v2067_v39, %s1866_s12 }
 0x1a3   :  { %492 = vrot.lane.b32.xlu1 %v2067_v39, %s1868_s0  ;;  %473 = vrot.lane.b32.xlu0 %v2067_v39, %s1867_s7 }
 0x1a6   :  { %v401_v43 = vpop.f32.mrb[2].mxu1 }
 0x1a7   :  { %511 = vrot.lane.b32.xlu0 %v2067_v39, %s1869_s13  ;;  %456 = vrot.lane.b32.xlu1 %v2069_v40, %s1865_s11  ;;  %v412_v45 = vmul.f32 %v408_v41, %v401_v43  ;;  %v403_v46 = vpop.f32.mrb[3].mxu1 }
 0x1a8   :  { %v413_v48 = vmul.f32 %v409_v42, %v403_v46 }
 0x1a9   :  { %v420_v49 = vadd.f32 %v416_v44, %v412_v45 }
 0x1aa   :  { %v421_v50 = vadd.f32 %v417_v47, %v413_v48 }
 0x1ab   :  { %475 = vrot.lane.b32.xlu1 %v2069_v40, %s1867_s7  ;;  %437 = vrot.lane.b32.xlu0 %v2069_v40, %s1866_s12  ;;  %v2099_v51 = vmax.f32 %v420_v49, 0.0 }
 0x1ac   :  { %v425_v52 = vmax.f32 %v421_v50, 0.0 }
 0x1ae   :  { %430 = vst.msk [vmem:[#allocation3 + $0x18] sm:$0xff] %vm429_vm12, %v425_v52 }
 0x1af   :  { %494 = vrot.lane.b32.xlu1 %v2069_v40, %s1868_s0  ;;  %549 = vrot.lane.b32.xlu0 %v2067_v39, %s1871_s15 }
 0x1b3   :  { %513 = vrot.lane.b32.xlu1 %v2069_v40, %s1869_s13  ;;  %458 = vrot.lane.b32.xlu0 %v2099_v51, %s1865_s11 }
 0x1b5   :  { %v591_v45 = vld [vmem:[#allocation3 + $0x18] sm:$0xff] }
 0x1b7   :  { %477 = vrot.lane.b32.xlu0 %v2099_v51, %s1867_s7  ;;  %439 = vrot.lane.b32.xlu1 %v2099_v51, %s1866_s12 }
 0x1bb   :  { %496 = vrot.lane.b32.xlu0 %v2099_v51, %s1868_s0  ;;  %532 = vrot.lane.b32.xlu1 %v2069_v40, %s1870_s14 }
 0x1bf   :  { %515 = vrot.lane.b32.xlu0 %v2099_v51, %s1869_s13  ;;  %551 = vrot.lane.b32.xlu1 %v2069_v40, %s1871_s15 }
 0x1c3   :  { %534 = vrot.lane.b32.xlu0 %v2099_v51, %s1870_s14  ;;  %530 = vrot.lane.b32.xlu1 %v2067_v39, %s1870_s14 }
 0x1c7   :  { %553 = vrot.lane.b32.xlu0 %v2099_v51, %s1871_s15  ;;  %570 = vrot.lane.b32.xlu1 %v2069_v40, %s1872_s16 }
 0x1cb   :  { %572 = vrot.lane.b32.xlu0 %v2099_v51, %s1872_s16  ;;  %441 = vrot.lane.b32.xlu1 %v425_v52, %s1866_s12 }
 0x1cf   :  { %568 = vrot.lane.b32.xlu0 %v2067_v39, %s1872_s16  ;;  %460 = vrot.lane.b32.xlu1 %v425_v52, %s1865_s11 }
 0x1d3   :  { %479 = vrot.lane.b32.xlu0 %v425_v52, %s1867_s7  ;;  %498 = vrot.lane.b32.xlu1 %v425_v52, %s1868_s0 }
 0x1d7   :  { %517 = vrot.lane.b32.xlu0 %v425_v52, %s1869_s13  ;;  %536 = vrot.lane.b32.xlu1 %v425_v52, %s1870_s14 }
 0x1db   :  { %555 = vrot.lane.b32.xlu0 %v425_v52, %s1871_s15  ;;  %574 = vrot.lane.b32.xlu1 %v425_v52, %s1872_s16 }
 0x211   :  { %v455_v53 = vpop.permute.xlu1 %454  ;;  %v436_v54 = vpop.permute.xlu0 %435 }
 0x215   :  { %v493_v55 = vpop.permute.xlu1 %492  ;;  %v474_v56 = vpop.permute.xlu0 %473 }
 0x219   :  { %v512_v57 = vpop.permute.xlu0 %511  ;;  %v457_v58 = vpop.permute.xlu1 %456 }
 0x21a   :  { %v462_v59 = vsel %vm94_vm1, %v455_v53, %v457_v58 }
 0x21d   :  { %v476_v60 = vpop.permute.xlu1 %475  ;;  %v438_v61 = vpop.permute.xlu0 %437 }
 0x21e   :  { %v481_v62 = vsel %vm114_vm3, %v474_v56, %v476_v60  ;;  %v443_v63 = vsel %vm73_vm2, %v436_v54, %v438_v61 }
 0x21f   :  { %v1710_v13 = vpack.c.bf16 %v443_v63, %v2067_v39  ;;  %v1714_v18 = vpack.c.bf16 %v481_v62, %v462_v59 }
 0x221   :  { %v495_v0 = vpop.permute.xlu1 %494  ;;  %v550_v1 = vpop.permute.xlu0 %549 }
 0x222   :  { %v500_v2 = vsel %vm134_vm4, %v493_v55, %v495_v0 }
 0x225   :  { %v514_v3 = vpop.permute.xlu1 %513  ;;  %v459_v4 = vpop.permute.xlu0 %458 }
 0x226   :  { %v519_v5 = vsel %vm154_vm5, %v512_v57, %v514_v3  ;;  %v463_v7 = vsel %vm94_vm1, %v457_v58, %v459_v4 }
 0x227   :  { %v1718_v24 = vpack.c.bf16 %v519_v5, %v500_v2 }
 0x229   :  { %v478_v8 = vpop.permute.xlu0 %477  ;;  %v440_v9 = vpop.permute.xlu1 %439 }
 0x22a   :  { %v482_v10 = vsel %vm114_vm3, %v476_v60, %v478_v8  ;;  %v444_v11 = vsel %vm73_vm2, %v438_v61, %v440_v9 }
 0x22b   :  { %v1708_v12 = vpack.c.bf16 %v444_v11, %v2069_v40  ;;  %v1712_v16 = vpack.c.bf16 %v482_v10, %v463_v7  ;;  %v587_v40 = vld [vmem:[%s2283_s4] sm:$0xff] }
 0x22c   :  { %v955_v10 = vld [vmem:[#allocation5] sm:$0xff] }
 0x22d   :  { %v497_v14 = vpop.permute.xlu0 %496  ;;  %v533_v15 = vpop.permute.xlu1 %532  ;;  %1709 = vmatprep.subr.bf16.mxu1 %v1708_v12  ;;  %v971_v12 = vld [vmem:[#allocation5 + $0x80] sm:$0xff] }
 0x22e   :  { %v501_v17 = vsel %vm134_vm4, %v495_v0, %v497_v14  ;;  %1711 = vmatpush1.bf16.msra.mxu1 %v1710_v13  ;;  %v1742_v13 = vpack.c.bf16 %v971_v12, %v955_v10 }
 0x22f   :  { %1713 = vmatprep.subr.bf16.mxu1 %v1712_v16 }
 0x231   :  { %v516_v19 = vpop.permute.xlu0 %515  ;;  %v552_v20 = vpop.permute.xlu1 %551 }
 0x232   :  { %v520_v21 = vsel %vm154_vm5, %v514_v3, %v516_v19  ;;  %v557_v22 = vsel %vm194_vm7, %v550_v1, %v552_v20  ;;  %1715 = vmatpush1.bf16.msra.mxu1 %v1714_v18  ;;  %v1874_v18 = vmov 1966171168  }
 0x233   :  { %v1716_v23 = vpack.c.bf16 %v520_v21, %v501_v17  ;;  %v770_v17 = vld [vmem:[%s2284_s5] sm:$0xff]  ;;  %v771_v21 = vld [vmem:[%s2284_s5 + $0x8] sm:$0xff] }
 0x235   :  { %v535_v25 = vpop.permute.xlu0 %534  ;;  %v531_v26 = vpop.permute.xlu1 %530  ;;  %1717 = vmatprep.subr.bf16.mxu1 %v1716_v23  ;;  %v778_v23 = vld [vmem:[%s2285_s6] sm:$0xff] }
 0x236   :  { %v539_v27 = vsel %vm174_vm6, %v533_v15, %v535_v25  ;;  %v538_v28 = vsel %vm174_vm6, %v531_v26, %v533_v15  ;;  %1719 = vmatpush1.bf16.msra.mxu1 %v1718_v24  ;;  %v974_v15 = vld [vmem:[#allocation5 + $0x98] sm:$0xff]  ;;  %v779_v26 = vld [vmem:[%s2285_s6 + $0x8] sm:$0xff] }
 0x237   :  { %v1722_v33 = vpack.c.bf16 %v557_v22, %v538_v28 }
 0x239   :  { %v554_v29 = vpop.permute.xlu0 %553  ;;  %v571_v30 = vpop.permute.xlu1 %570 }
 0x23a   :  { %v558_v31 = vsel %vm194_vm7, %v552_v20, %v554_v29  ;;  %v800_v20 = vlaneseq }
 0x23b   :  { %v1720_v32 = vpack.c.bf16 %v558_v31, %v539_v27 }
 0x23c   :  { %vm2198_vm14 = vcmp.lt.s32.totalorder %v800_v20, 256  ;;  %vm2230_vm15 = vcmp.lt.s32.totalorder %v800_v20, 188 }
 0x23d   :  { %v573_v34 = vpop.permute.xlu0 %572  ;;  %v442_v35 = vpop.permute.xlu1 %441  ;;  %1721 = vmatprep.subr.bf16.mxu1 %v1720_v32 }
 0x23e   :  { %v577_v36 = vsel %vm214_vm8, %v571_v30, %v573_v34  ;;  %v445_v37 = vsel %vm73_vm2, %v440_v9, %v442_v35  ;;  %453 = vst.msk [vmem:[#allocation3 + $0x38] sm:$0xff] %vm429_vm12, %v442_v35  ;;  %1723 = vmatpush1.bf16.msra.mxu1 %v1722_v33  ;;  %v972_v9 = vld [vmem:[#allocation5 + $0x88] sm:$0xff] }
 0x23f   :  { %644 = vmatprep.subr.mxu1 %v577_v36  ;;  %v1726_v50 = vpack.c.bf16 %v445_v37, %v2099_v51 }
 0x241   :  { %v569_v38 = vpop.permute.xlu0 %568  ;;  %v461_v39 = vpop.permute.xlu1 %460 }
 0x242   :  { %v576_v41 = vsel %vm214_vm8, %v569_v38, %v571_v30  ;;  %v464_v42 = vsel %vm94_vm1, %v459_v4, %v461_v39  ;;  %472 = vst.msk [vmem:[#allocation3 + $0x58] sm:$0xff] %vm429_vm12, %v461_v39  ;;  %v961_v39 = vld [vmem:[#allocation5 + $0x30] sm:$0xff]  ;;  %vm1665_vm1 = vcmask 123904  }
 0x243   :  { %645 = vmatpush1.msra.mxu1 %v576_v41 }
 0x244   :  { %1688 = vmatmul.mubr.msk.f32.vlgmr.msra.gmra.mrb[4].mxu1 %vm624_vm13, %v587_v40 }
 0x245   :  { %v480_v43 = vpop.permute.xlu0 %479  ;;  %v499_v44 = vpop.permute.xlu1 %498  ;;  %v595_v46 = vld [vmem:[#allocation3 + $0x38] sm:$0xff]  ;;  %763 = vmatprep.mubr.f32.mxu1 %v1873_v6 }
 0x246   :  { %v483_v47 = vsel %vm114_vm3, %v478_v8, %v480_v43  ;;  %491 = vst.msk [vmem:[#allocation3 + $0x78] sm:$0xff] %vm429_vm12, %v480_v43  ;;  %v502_v48 = vsel %vm134_vm4, %v497_v14, %v499_v44  ;;  %510 = vst.msk [vmem:[#allocation3 + $0x98] sm:$0xff] %vm429_vm12, %v499_v44  ;;  %v1724_v49 = vpack.c.bf16 %v595_v46, %v591_v45  ;;  %v956_v8 = vld [vmem:[#allocation5 + $0x8] sm:$0xff]  ;;  %v958_v14 = vld [vmem:[#allocation5 + $0x18] sm:$0xff] }
 0x247   :  { %v1730_v61 = vpack.c.bf16 %v483_v47, %v464_v42  ;;  %v1740_v11 = vpack.c.bf16 %v972_v9, %v956_v8  ;;  %v1744_v16 = vpack.c.bf16 %v974_v15, %v958_v14 }
 0x248   :  { %1725 = vmatprep.subr.bf16.mxu1 %v1724_v49 }
 0x249   :  { %v518_v52 = vpop.permute.xlu0 %517  ;;  %v537_v53 = vpop.permute.xlu1 %536  ;;  %1727 = vmatpush1.bf16.msra.mxu1 %v1726_v50  ;;  %v599_v57 = vld [vmem:[#allocation3 + $0x58] sm:$0xff]  ;;  %1741 = vmatprep.subr.bf16.mxu0 %v1740_v11  ;;  %v772_v50 = vld [vmem:[%s2284_s5 + $0x10] sm:$0xff] }
 0x24a   :  { %v521_v54 = vsel %vm154_vm5, %v516_v19, %v518_v52  ;;  %529 = vst.msk [vmem:[#allocation3 + $0xb8] sm:$0xff] %vm429_vm12, %v518_v52  ;;  %v540_v6 = vsel %vm174_vm6, %v535_v25, %v537_v53  ;;  %548 = vst.msk [vmem:[#allocation3 + $0xd8] sm:$0xff] %vm429_vm12, %v537_v53  ;;  %1743 = vmatpush1.bf16.xpose.msra.mxu0 %v1742_v13  ;;  %v798_v19 = vunpack.c.l.s4 %v1874_v18  ;;  %v773_v52 = vld [vmem:[%s2284_s5 + $0x18] sm:$0xff]  ;;  %v957_v18 = vld [vmem:[#allocation5 + $0x10] sm:$0xff] }
 0x24b   :  { %v1734_v1 = vpack.c.bf16 %v521_v54, %v502_v48  ;;  %1745 = vmatprep.subr.bf16.mxu0 %v1744_v16  ;;  %v780_v54 = vld [vmem:[%s2285_s6 + $0x10] sm:$0xff] }
 0x24c   :  { %v799_v28 = vunpack.c.0.s8 %v798_v19  ;;  %v973_v19 = vld [vmem:[#allocation5 + $0x90] sm:$0xff] }
 0x24d   :  { %v556_v55 = vpop.permute.xlu0 %555  ;;  %v575_v56 = vpop.permute.xlu1 %574  ;;  %v603_v58 = vld [vmem:[#allocation3 + $0x78] sm:$0xff] }
 0x24e   :  { %v559_v59 = vsel %vm194_vm7, %v554_v29, %v556_v55  ;;  %567 = vst.msk [vmem:[#allocation3 + $0xf8] sm:$0xff] %vm429_vm12, %v556_v55  ;;  %v578_v51 = vsel %vm214_vm8, %v573_v34, %v575_v56  ;;  %586 = vst.msk [vmem:[#allocation3 + $0x118] sm:$0xff] %vm429_vm12, %v575_v56  ;;  %v1728_v60 = vpack.c.bf16 %v603_v58, %v599_v57  ;;  %v607_v62 = vld [vmem:[#allocation3 + $0x98] sm:$0xff]  ;;  %v2195_v29 = vshrl.u32 %v800_v20, 7 }
 0x24f   :  { %v1738_v5 = vpack.c.bf16 %v559_v59, %v540_v6  ;;  %v781_v56 = vld [vmem:[%s2285_s6 + $0x18] sm:$0xff] }
 0x250   :  { %1729 = vmatprep.subr.bf16.mxu1 %v1728_v60  ;;  %v802_v34 = vsub.s32 %v799_v28, %v2195_v29 }
 0x251   :  { %1731 = vmatpush1.bf16.msra.mxu1 %v1730_v61  ;;  %v611_v63 = vld [vmem:[#allocation3 + $0xb8] sm:$0xff] }
 0x252   :  { %v1732_v0 = vpack.c.bf16 %v611_v63, %v607_v62  ;;  %v615_v2 = vld [vmem:[#allocation3 + $0xd8] sm:$0xff] }
 0x254   :  { %1733 = vmatprep.subr.bf16.mxu1 %v1732_v0 }
 0x255   :  { %1735 = vmatpush1.bf16.msra.mxu1 %v1734_v1  ;;  %v619_v3 = vld [vmem:[#allocation3 + $0xf8] sm:$0xff]  ;;  %v967_v1 = vld [vmem:[#allocation5 + $0x60] sm:$0xff] }
 0x256   :  { %v1736_v4 = vpack.c.bf16 %v619_v3, %v615_v2  ;;  %v623_v7 = vld [vmem:[#allocation3 + $0x118] sm:$0xff]  ;;  %v1875_v2 = vmov 1983009808  }
 0x257   :  { %v1000_v3 = vunpack.c.l.s4 %v1875_v2  ;;  %v983_v2 = vld [vmem:[#allocation5 + $0xe0] sm:$0xff] }
 0x258   :  { %1737 = vmatprep.subr.bf16.mxu1 %v1736_v4 }
 0x259   :  { %1739 = vmatpush1.bf16.msra.mxu1 %v1738_v5  ;;  %v1001_v15 = vunpack.c.0.s8 %v1000_v3 }
 0x25a   :  { %715 = vmatprep.subr.mxu1 %v623_v7 }
 0x25b   :  { %v2251_v16 = vsub.s32 %v1001_v15, %v2195_v29  ;;  %v959_v29 = vld [vmem:[#allocation5 + $0x20] sm:$0xff] }
 0x25d   :  { %716 = vmatpush1.msra.mxu1 %v578_v51 }
 0x25e   :  { %1689 = vmatmul.mubr.msk.f32.vlgmr.msra.gmra.mrb[6].mxu1 %vm624_vm13, %v587_v40 }
 0x317   :  { %v694_v22 = vpop.f32.mrb[4].mxu1 }
 0x318   :  { %v774_v24 = vmul.f32 %v770_v17, %v694_v22  ;;  %v696_v25 = vpop.f32.mrb[5].mxu1  ;;  %v960_v22 = vld [vmem:[#allocation5 + $0x28] sm:$0xff] }
 0x319   :  { %v775_v27 = vmul.f32 %v771_v21, %v696_v25  ;;  %v1746_v25 = vpack.c.bf16 %v973_v19, %v957_v18 }
 0x31a   :  { %v782_v30 = vadd.f32 %v778_v23, %v774_v24  ;;  %v976_v23 = vld [vmem:[#allocation5 + $0xa8] sm:$0xff] }
 0x31b   :  { %v783_v31 = vadd.f32 %v779_v26, %v775_v27  ;;  %v1748_v27 = vpack.c.bf16 %v976_v23, %v960_v22 }
 0x31c   :  { %v786_v32 = vmax.f32 %v782_v30, 0.0 }
 0x31d   :  { %v787_v33 = vmax.f32 %v783_v31, 0.0  ;;  %v975_v31 = vld [vmem:[#allocation5 + $0xa0] sm:$0xff] }
 0x31f   :  { %v796_v35 = vcombine.low %v786_v32, %v787_v33  ;;  %v836_v36 = vcombine.high %v786_v32, %v787_v33  ;;  %v962_v33 = vld [vmem:[#allocation5 + $0x38] sm:$0xff] }
 0x321   :  { %v803_v37 = vrot.slane %v796_v35, %v802_v34  ;;  %v843_v38 = vrot.slane %v836_v36, %v802_v34  ;;  %v1750_v35 = vpack.c.bf16 %v975_v31, %v959_v29 }
 0x323   :  { %v810_v40 = vrot.slane %v803_v37, %v802_v34  ;;  %v817_v41 = vcombine.high %v803_v37, %v803_v37  ;;  %v850_v42 = vrot.slane %v843_v38, %v802_v34  ;;  %v854_v43 = vcombine.high %v843_v38, %v843_v38 }
 0x325   :  { %816 = vst.msk [vmem:[#allocation4] ss:$2 sm:$0x3] %vm2198_vm14, %v810_v40  ;;  %v824_v44 = vrot.slane %v817_v41, %v802_v34  ;;  %v828_v45 = vcombine.high %v810_v40, %v810_v40  ;;  %853 = vst.msk [vmem:[#allocation4 + $0x10] ss:$2 sm:$0x3] %vm2198_vm14, %v850_v42  ;;  %v861_v46 = vrot.slane %v854_v43, %v802_v34 }
 0x326   :  { %v865_v47 = vcombine.high %v850_v42, %v850_v42  ;;  %v977_v40 = vld [vmem:[#allocation5 + $0xb0] sm:$0xff]  ;;  %v964_v42 = vld [vmem:[#allocation5 + $0x48] sm:$0xff] }
 0x327   :  { %827 = vst.msk [vmem:[#allocation4 + $0x4] ss:$2 sm:$0x3] %vm2198_vm14, %v824_v44  ;;  %831 = vst.msk [vmem:[#allocation4 + $0x8] ss:$2 sm:$0x3] %vm2198_vm14, %v828_v45  ;;  %v832_v48 = vcombine.high %v824_v44, %v824_v44  ;;  %v869_v49 = vcombine.high %v861_v46, %v861_v46  ;;  %v1754_v44 = vpack.c.bf16 %v977_v40, %v961_v39 }
 0x328   :  { %864 = vst.msk [vmem:[#allocation4 + $0x14] ss:$2 sm:$0x3] %vm2198_vm14, %v861_v46  ;;  %868 = vst.msk [vmem:[#allocation4 + $0x18] ss:$2 sm:$0x3] %vm2198_vm14, %v865_v47 }
 0x329   :  { %835 = vst.msk [vmem:[#allocation4 + $0xc] ss:$2 sm:$0x3] %vm2198_vm14, %v832_v48  ;;  %872 = vst.msk [vmem:[#allocation4 + $0x1c] ss:$2 sm:$0x3] %vm2198_vm14, %v869_v49 }
 0x32a   :  { %v980_v43 = vld [vmem:[#allocation5 + $0xc8] sm:$0xff]  ;;  %v963_v48 = vld [vmem:[#allocation5 + $0x40] sm:$0xff] }
 0x32b   :  { %v1756_v45 = vpack.c.bf16 %v980_v43, %v964_v42  ;;  %v979_v49 = vld [vmem:[#allocation5 + $0xc0] sm:$0xff] }
 0x331   :  { %v765_v53 = vpop.f32.mrb[6].mxu1 }
 0x332   :  { %v776_v6 = vmul.f32 %v772_v50, %v765_v53  ;;  %v767_v55 = vpop.f32.mrb[7].mxu1  ;;  %v982_v53 = vld [vmem:[#allocation5 + $0xd8] sm:$0xff] }
 0x333   :  { %v777_v57 = vmul.f32 %v773_v52, %v767_v55  ;;  %v966_v52 = vld [vmem:[#allocation5 + $0x58] sm:$0xff] }
 0x334   :  { %v784_v58 = vadd.f32 %v780_v54, %v776_v6  ;;  %v1758_v54 = vpack.c.bf16 %v979_v49, %v963_v48  ;;  %v1760_v6 = vpack.c.bf16 %v982_v53, %v966_v52 }
 0x335   :  { %v785_v59 = vadd.f32 %v781_v56, %v777_v57  ;;  %v965_v57 = vld [vmem:[#allocation5 + $0x50] sm:$0xff] }
 0x336   :  { %v788_v51 = vmax.f32 %v784_v58, 0.0  ;;  %v981_v58 = vld [vmem:[#allocation5 + $0xd0] sm:$0xff] }
 0x337   :  { %v789_v60 = vmax.f32 %v785_v59, 0.0 }
 0x339   :  { %v875_v61 = vcombine.low %v788_v51, %v789_v60  ;;  %v914_v62 = vcombine.high %v788_v51, %v789_v60  ;;  %v968_v51 = vld [vmem:[#allocation5 + $0x68] sm:$0xff] }
 0x33a   :  { %v984_v60 = vld [vmem:[#allocation5 + $0xe8] sm:$0xff] }
 0x33b   :  { %v882_v63 = vrot.slane %v875_v61, %v802_v34  ;;  %v921_v0 = vrot.slane %v914_v62, %v802_v34  ;;  %v1762_v61 = vpack.c.bf16 %v981_v58, %v965_v57  ;;  %v1764_v62 = vpack.c.bf16 %v984_v60, %v968_v51 }
 0x33d   :  { %v889_v4 = vrot.slane %v882_v63, %v802_v34  ;;  %v895_v5 = vcombine.high %v882_v63, %v882_v63  ;;  %v928_v7 = vrot.slane %v921_v0, %v802_v34  ;;  %v932_v8 = vcombine.high %v921_v0, %v921_v0 }
 0x33f   :  { %894 = vst.msk [vmem:[#allocation4 + $0x1] ss:$2 sm:$0x3] %vm2230_vm15, %v889_v4  ;;  %v902_v9 = vrot.slane %v895_v5, %v802_v34  ;;  %v906_v10 = vcombine.high %v889_v4, %v889_v4  ;;  %931 = vst.msk [vmem:[#allocation4 + $0x11] ss:$2 sm:$0x3] %vm2230_vm15, %v928_v7  ;;  %v939_v11 = vrot.slane %v932_v8, %v802_v34 }
 0x340   :  { %v943_v12 = vcombine.high %v928_v7, %v928_v7  ;;  %v978_v34 = vld [vmem:[#allocation5 + $0xb8] sm:$0xff]  ;;  %v1766_v7 = vpack.c.bf16 %v983_v2, %v967_v1 }
 0x341   :  { %905 = vst.msk [vmem:[#allocation4 + $0x5] ss:$2 sm:$0x3] %vm2230_vm15, %v902_v9  ;;  %909 = vst.msk [vmem:[#allocation4 + $0x9] ss:$2 sm:$0x3] %vm2230_vm15, %v906_v10  ;;  %v910_v13 = vcombine.high %v902_v9, %v902_v9  ;;  %v947_v14 = vcombine.high %v939_v11, %v939_v11  ;;  %v1752_v36 = vpack.c.bf16 %v978_v34, %v962_v33 }
 0x342   :  { %942 = vst.msk [vmem:[#allocation4 + $0x15] ss:$2 sm:$0x3] %vm2230_vm15, %v939_v11  ;;  %946 = vst.msk [vmem:[#allocation4 + $0x19] ss:$2 sm:$0x3] %vm2230_vm15, %v943_v12 }
 0x343   :  { %913 = vst.msk [vmem:[#allocation4 + $0xd] ss:$2 sm:$0x3] %vm2230_vm15, %v910_v13  ;;  %950 = vst.msk [vmem:[#allocation4 + $0x1d] ss:$2 sm:$0x3] %vm2230_vm15, %v947_v14 }
 0x344   :  { %v970_v4 = vld [vmem:[#allocation5 + $0x78] sm:$0xff]  ;;  %v969_v11 = vld [vmem:[#allocation5 + $0x70] sm:$0xff]  ;;  %v1691_v33 = vld [vmem:[%s2288_s9] ss:$0 sm:$0xff] }
 0x345   :  { %v986_v5 = vld [vmem:[#allocation5 + $0xf8] sm:$0xff]  ;;  %v985_v12 = vld [vmem:[#allocation5 + $0xf0] sm:$0xff] }
 0x346   :  { %v1768_v8 = vpack.c.bf16 %v986_v5, %v970_v4  ;;  %v1770_v14 = vpack.c.bf16 %v985_v12, %v969_v11 }
 0x348   :  { %v951_v17 = vld [vmem:[#allocation4] sm:$0xff] }
 0x349   :  { %v998_v20 = vcombine.high %v951_v17, %v951_v17  ;;  %v1005_v21 = vrot.slane %v951_v17, %v2251_v16  ;;  %v953_v47 = vld [vmem:[#allocation4 + $0x10] sm:$0xff]  ;;  %v1690_v17 = vld [vmem:[%s2287_s8] ss:$0 sm:$0xff] }
 0x34a   :  { %v952_v30 = vld [vmem:[#allocation4 + $0x8] sm:$0xff]  ;;  %v1039_v50 = vrot.slane %v953_v47, %v2251_v16  ;;  %v1032_v56 = vcombine.high %v953_v47, %v953_v47  ;;  %v954_v0 = vld [vmem:[#allocation4 + $0x18] sm:$0xff] }
 0x34b   :  { %v1013_v24 = vcombine.high %v1005_v21, %v1005_v21  ;;  %v1012_v26 = vrot.slane %v998_v20, %v2251_v16  ;;  %v1022_v32 = vrot.slane %v952_v30, %v2251_v16  ;;  %v1015_v38 = vcombine.high %v952_v30, %v952_v30 }
 0x34c   :  { %v1047_v55 = vcombine.high %v1039_v50, %v1039_v50  ;;  %v1046_v59 = vrot.slane %v1032_v56, %v2251_v16  ;;  %v1056_v3 = vrot.slane %v954_v0, %v2251_v16  ;;  %v1049_v10 = vcombine.high %v954_v0, %v954_v0 }
 0x34d   :  { %1146 = vmatprep.mubr.f32.mxu0 %v1013_v24  ;;  %v1014_v28 = vcombine.high %v1012_v26, %v1012_v26  ;;  %v1030_v37 = vcombine.high %v1022_v32, %v1022_v32  ;;  %v1029_v41 = vrot.slane %v1015_v38, %v2251_v16 }
 0x34e   :  { %1147 = vmatmul.mubr.f32.vlgmr.msra.gmra.mrb[0].mxu0 %v1005_v21  ;;  %v1048_v63 = vcombine.high %v1046_v59, %v1046_v59  ;;  %v1064_v9 = vcombine.high %v1056_v3, %v1056_v3  ;;  %v1063_v13 = vrot.slane %v1049_v10, %v2251_v16 }
 0x34f   :  { %1747 = vmatpush1.bf16.xpose.msra.mxu0 %v1746_v25  ;;  %1216 = vmatprep.mubr.f32.mxu0 %v1014_v28  ;;  %v1031_v46 = vcombine.high %v1029_v41, %v1029_v41 }
 0x350   :  { %1749 = vmatprep.subr.bf16.mxu0 %v1748_v27  ;;  %v1065_v15 = vcombine.high %v1063_v13, %v1063_v13 }
 0x356   :  { %1217 = vmatmul.mubr.f32.vlgmr.msra.gmra.mrb[0].mxu0 %v1012_v26 }
 0x357   :  { %1751 = vmatpush1.bf16.xpose.msra.mxu0 %v1750_v35  ;;  %1286 = vmatprep.mubr.f32.mxu0 %v1030_v37 }
 0x358   :  { %1753 = vmatprep.subr.bf16.mxu0 %v1752_v36 }
 0x35e   :  { %1287 = vmatmul.mubr.f32.vlgmr.msra.gmra.mrb[0].mxu0 %v1022_v32 }
 0x35f   :  { %1755 = vmatpush1.bf16.xpose.msra.mxu0 %v1754_v44  ;;  %1356 = vmatprep.mubr.f32.mxu0 %v1031_v46 }
 0x360   :  { %1757 = vmatprep.subr.bf16.mxu0 %v1756_v45 }
 0x366   :  { %1357 = vmatmul.mubr.f32.vlgmr.msra.gmra.mrb[0].mxu0 %v1029_v41 }
 0x367   :  { %1759 = vmatpush1.bf16.xpose.msra.mxu0 %v1758_v54  ;;  %1426 = vmatprep.mubr.f32.mxu0 %v1047_v55 }
 0x368   :  { %1761 = vmatprep.subr.bf16.mxu0 %v1760_v6 }
 0x36e   :  { %1427 = vmatmul.mubr.f32.vlgmr.msra.gmra.mrb[0].mxu0 %v1039_v50 }
 0x36f   :  { %1763 = vmatpush1.bf16.xpose.msra.mxu0 %v1762_v61  ;;  %1496 = vmatprep.mubr.f32.mxu0 %v1048_v63 }
 0x370   :  { %1765 = vmatprep.subr.bf16.mxu0 %v1764_v62 }
 0x376   :  { %1497 = vmatmul.mubr.f32.vlgmr.msra.gmra.mrb[0].mxu0 %v1046_v59 }
 0x377   :  { %1767 = vmatpush1.bf16.xpose.msra.mxu0 %v1766_v7  ;;  %1566 = vmatprep.mubr.f32.mxu0 %v1064_v9 }
 0x378   :  { %1769 = vmatprep.subr.bf16.mxu0 %v1768_v8 }
 0x37e   :  { %1567 = vmatmul.mubr.f32.vlgmr.msra.gmra.mrb[0].mxu0 %v1056_v3 }
 0x37f   :  { %1771 = vmatpush1.bf16.xpose.msra.mxu0 %v1770_v14  ;;  %1636 = vmatprep.mubr.f32.mxu0 %v1065_v15 }
 0x386   :  { %1637 = vmatmul.mubr.f32.vlgmr.msra.gmra.mrb[0].mxu0 %v1063_v13 }
 0x459   :  { %v1638_v18 = vpop.f32.mrb[0].mxu0 }
 0x45a   :  { %v1772_v19 = vadd.f32 %v1690_v17, %v1638_v18  ;;  %v1640_v20 = vpop.f32.mrb[1].mxu0 }
 0x45c   :  { %v1643_v21 = vand.u32 2147483647, %v1772_v19  ;;  %v1642_v31 = vmax.f32 %v1772_v19, 0.0 }
 0x45e   :  { %v1644_v22 = vsub.f32 0.0, %v1643_v21 }
 0x460   :  { %v1645_v23 = vmul.f32 1.442695, %v1644_v22 }
 0x462   :  { %1810 = vpow2.f32 %v1645_v23 }
 0x46c   :  { %v1811_v24 = vpop.eup %1810 }
 0x46d   :  { %v1647_v25 = vadd.f32 1.0, %v1811_v24  ;;  %v1650_v16 = vmul.f32 -0.5, %v1811_v24  ;;  %v1653_v27 = vand.u32 2147483647, %v1811_v24 }
 0x46f   :  { %1812 = vlog2.f32 %v1647_v25  ;;  %v1651_v26 = vadd.f32 1.0, %v1650_v16  ;;  %vm1654_vm0 = vcmp.lt.f32.partialorder %v1653_v27, 0.0004427343 }
 0x471   :  { %v1652_v29 = vmul.f32 %v1811_v24, %v1651_v26 }
 0x479   :  { %v1813_v28 = vpop.eup %1812 }
 0x47a   :  { %v1649_v30 = vmul.f32 0.6931472, %v1813_v28 }
 0x47c   :  { %v1655_v32 = vsel %vm1654_vm0, %v1652_v29, %v1649_v30 }
 0x47d   :  { %v1656_v34 = vadd.f32 %v1655_v32, %v1642_v31 }
 0x47f   :  { %v1664_v35 = vmul.f32 %v1691_v33, %v1656_v34 }
 0x481   :  { %1666 = vst.msk [vmem:[#allocation8] sm:$0x3] %vm1665_vm1, %v1664_v35 }
 0x482   :  { %1847 = shalt.err (!%p1844_p12)
}
 0x483   :  { %s1848_s18 = scalar_lea.hbm %s2289_s10, 32 }
 0x484   :  { %p1849_p13 = scmp.ne.s32.totalorder %s2289_s10, %s1848_s18  ;;  %p1852_p0 = scmp.lt.u32.totalorder %s1848_s18, %s2289_s10 }
 0x486   :  { %p1854_p1 = pnand %p1852_p0, %p1849_p13 }
 0x488   :  { %1857 = shalt.err (!%p1854_p1)
}
 0x489   :  { %1676 = dma.vmem_to_hbm [thread:$0]  %s1674_s28, 32, %s2289_s10, [#allocation7]  }
 0x48a   :  { %1860 = dma.done.wait [#allocation7], 32  }
 0x48b   :  { %1861 = vsyncadd [#allocation7], 4294967264 }
 0x48c   :  { %1680 = vsyncpa [#allocation6], 1 }
 0x48d   :  { %1681 = vsyncpa [#allocation7], 1 }

</bundles_post_ra>
